<compile_context>
chip_gen: v5e
topology: v5e:2x2
jax: 0.10.0
libtpu: 0.0.40
codegen_flags: <defaults>
</compile_context>

<pallas_src>
import functools
import math

import jax
import jax.numpy as jnp
from jax import lax
from jax.experimental import pallas as pl
from jax.experimental.pallas import tpu as pltpu

LN_EPS = 1e-5


def _layernorm(x, gamma, beta):
    # x: (S, E) f32; gamma/beta: (1, E). Matches torch.nn.LayerNorm (biased var).
    mean = jnp.mean(x, axis=-1, keepdims=True)
    var = jnp.mean((x - mean) ** 2, axis=-1, keepdims=True)
    return (x - mean) * lax.rsqrt(var + LN_EPS) * gamma + beta


# --------------------------------------------------------------------------
# Fused per-batch kernel: embedding gather -> L encoder layers -> fc
# grid = (B,)  (attention is independent across batch rows)
# --------------------------------------------------------------------------
def transformer_kernel(num_heads, seq_len,
                       ids_ref, emb_ref,
                       win_ref, bin_ref, wo_ref, bo_ref,
                       g1_ref, be1_ref, w1_ref, b1_ref, w2_ref, b2_ref,
                       g2_ref, be2_ref, wfc_ref, bfc_ref,
                       out_ref, xbuf_ref):
    f32 = jnp.float32
    bf16 = jnp.bfloat16
    S = seq_len
    V, E = emb_ref.shape
    H = num_heads
    dh = E // H
    L = win_ref.shape[0]
    b = pl.program_id(0)                       # which batch this core handles

    # ---- embedding: O(S*E) dynamic row gather (ids live in SMEM) ----------
    for i in range(S):                          # S is small & static
        tok = ids_ref[b * S + i]
        xbuf_ref[pl.ds(i, 1), :] = emb_ref[pl.ds(tok, 1), :]
    x = xbuf_ref[...]                           # (S, E) f32

    for l in range(L):
        # ---- multi-head self-attention (fused QKV projection) ------------
        xb = x.astype(bf16)                                            # cast once
        qkv = jnp.dot(xb, win_ref[l], preferred_element_type=f32) + bin_ref[l]  # (S,3E)

        # head split: static dh-wide lane slices stacked on a new leading axis
        q = jnp.stack([qkv[:, h * dh:(h + 1) * dh] for h in range(H)], 0).astype(bf16)
        k = jnp.stack([qkv[:, E + h * dh:E + (h + 1) * dh] for h in range(H)], 0).astype(bf16)
        v = jnp.stack([qkv[:, 2 * E + h * dh:2 * E + (h + 1) * dh] for h in range(H)], 0).astype(bf16)

        # scores (1/sqrt(dh) already folded into the Q weights/bias on host)
        s = jnp.einsum('hqd,hkd->hqk', q, k, preferred_element_type=f32)   # (H,S,S)
        s = s - jnp.max(s, axis=-1, keepdims=True)
        p = jnp.exp(s)
        p = p * pl.reciprocal(jnp.sum(p, axis=-1, keepdims=True), approx=True)

        attn = jnp.einsum('hqk,hkd->hqd', p.astype(bf16), v,
                          preferred_element_type=f32)                       # (H,S,dh)
        # lane-concat heads -> (S, E); single (S,E)@(E,E) output projection
        attn = jnp.concatenate([attn[h] for h in range(H)], axis=-1)
        attn_out = jnp.dot(attn.astype(bf16), wo_ref[l],
                           preferred_element_type=f32) + bo_ref[l]          # (S, E)

        x = _layernorm(x + attn_out, g1_ref[l], be1_ref[l])

        # ---- feed-forward (ReLU) ------------------------------------------
        xb2 = x.astype(bf16)
        h1 = jnp.dot(xb2, w1_ref[l], preferred_element_type=f32) + b1_ref[l]
        h1 = jnp.maximum(h1, 0.0)
        ffn = jnp.dot(h1.astype(bf16), w2_ref[l], preferred_element_type=f32) + b2_ref[l]

        x = _layernorm(x + ffn, g2_ref[l], be2_ref[l])

    # ---- final vocabulary projection (lane-dense, V padded to 128k) -------
    out_ref[...] = jnp.dot(x.astype(bf16), wfc_ref[...],
                           preferred_element_type=f32) + bfc_ref[...]


# --------------------------------------------------------------------------
# Wrapper: one pallas_call, grid over batch
# --------------------------------------------------------------------------
def transformer_forward(src, kparams, num_heads):
    # src: (S, B) int32 token ids (PyTorch seq-first convention); S must be 8k.
    S, B = src.shape
    E = kparams['emb'].shape[1]
    V = kparams['vocab_size']
    V_pad = kparams['wfc'].shape[1]
    N = B * S

    ids = jnp.transpose(src).reshape(N).astype(jnp.int32)   # batch-major rows

    inputs = (ids, kparams['emb'],
              kparams['win'], kparams['bin'], kparams['wo'], kparams['bo'],
              kparams['g1'], kparams['be1'], kparams['w1'], kparams['b1'],
              kparams['w2'], kparams['b2'], kparams['g2'], kparams['be2'],
              kparams['wfc'], kparams['bfc'])

    smem_spec = pl.BlockSpec(memory_space=pltpu.MemorySpace.SMEM)
    vmem_spec = pl.BlockSpec(memory_space=pltpu.MemorySpace.VMEM)

    out = pl.pallas_call(
        functools.partial(transformer_kernel, num_heads, S),
        out_shape=jax.ShapeDtypeStruct((N, V_pad), jnp.float32),
        grid=(B,),
        in_specs=[smem_spec] + [vmem_spec] * (len(inputs) - 1),
        out_specs=pl.BlockSpec((S, V_pad), lambda b: (b, 0)),
        scratch_shapes=[pltpu.VMEM((S, E), jnp.float32)],
        compiler_params=pltpu.CompilerParams(
            dimension_semantics=("parallel",),
            vmem_limit_bytes=64 * 1024 * 1024),
    )(*inputs)

    # strip vocab padding, back to PyTorch (S, B, V) order
    return out[:, :V].reshape(B, S, V).transpose(1, 0, 2)


# --------------------------------------------------------------------------
# Synthetic parameters (PyTorch layout) + host-side re-layout for the kernel
# --------------------------------------------------------------------------
def init_params(key, vocab_size, embed_size, num_heads, hidden_dim, num_layers):
    """Deterministic synthetic weights in PyTorch nn.TransformerEncoderLayer layout."""
    def normal(k, shape, scale=0.02):
        return (scale * jax.random.normal(k, shape)).astype(jnp.float32)

    keys = jax.random.split(key, 2 + num_layers)
    E, Hd = embed_size, hidden_dim
    params = {
        'embedding': normal(keys[0], (vocab_size, E)),
        'fc_w': normal(keys[1], (vocab_size, E)),          # torch Linear: (out, in)
        'fc_b': jnp.zeros((vocab_size,), jnp.float32),
        'layers': [],
    }
    for li in range(num_layers):
        lk = jax.random.split(keys[2 + li], 4)
        params['layers'].append(dict(
            in_proj_weight=normal(lk[0], (3 * E, E)),
            in_proj_bias=jnp.zeros((3 * E,), jnp.float32),
            out_proj_weight=normal(lk[1], (E, E)),
            out_proj_bias=jnp.zeros((E,), jnp.float32),
            norm1_weight=jnp.ones((E,), jnp.float32),
            norm1_bias=jnp.zeros((E,), jnp.float32),
            linear1_weight=normal(lk[2], (Hd, E)),
            linear1_bias=jnp.zeros((Hd,), jnp.float32),
            linear2_weight=normal(lk[3], (E, Hd)),
            linear2_bias=jnp.zeros((E,), jnp.float32),
            norm2_weight=jnp.ones((E,), jnp.float32),
            norm2_bias=jnp.zeros((E,), jnp.float32),
        ))
    return params


def prepare_params(params, num_heads):
    """Host-side re-layout:
       * in_proj kept fused (E, 3E), pre-transposed for x @ W, 1/sqrt(dh) folded
         into the Q columns (weights + bias),
       * Wo / W1 / W2 / Wfc pre-transposed, matmul weights cast to bf16,
       * fc padded along vocab to a 128-multiple for lane-dense output stores,
       * per-layer tensors stacked on a leading layer axis."""
    emb = params['embedding']
    V, E = emb.shape
    H = num_heads
    dh = E // H
    scale = 1.0 / math.sqrt(dh)
    bf16 = jnp.bfloat16
    V_pad = ((V + 127) // 128) * 128

    col_scale = jnp.concatenate(
        [jnp.full((E,), scale, jnp.float32), jnp.ones((2 * E,), jnp.float32)]
    ).reshape(1, 3 * E)

    win, bin_, wo, bo = [], [], [], []
    g1, be1, w1, b1, w2, b2, g2, be2 = ([] for _ in range(8))
    for lp in params['layers']:
        w_in = jnp.transpose(lp['in_proj_weight'])            # (E, 3E), x @ W form
        b_in = lp['in_proj_bias'].reshape(1, 3 * E)
        win.append((w_in * col_scale).astype(bf16))            # fold softmax scale
        bin_.append(b_in * col_scale)
        wo.append(jnp.transpose(lp['out_proj_weight']).astype(bf16))   # (E, E)
        bo.append(lp['out_proj_bias'].reshape(1, E))
        g1.append(lp['norm1_weight'].reshape(1, E))
        be1.append(lp['norm1_bias'].reshape(1, E))
        w1.append(jnp.transpose(lp['linear1_weight']).astype(bf16))    # (E, Hd)
        b1.append(lp['linear1_bias'].reshape(1, -1))
        w2.append(jnp.transpose(lp['linear2_weight']).astype(bf16))    # (Hd, E)
        b2.append(lp['linear2_bias'].reshape(1, E))
        g2.append(lp['norm2_weight'].reshape(1, E))
        be2.append(lp['norm2_bias'].reshape(1, E))

    wfc = jnp.pad(jnp.transpose(params['fc_w']), ((0, 0), (0, V_pad - V))).astype(bf16)
    bfc = jnp.pad(params['fc_b'], (0, V_pad - V)).reshape(1, V_pad)

    stack = lambda xs: jnp.stack(xs, axis=0)
    return {
        'vocab_size': V,
        'emb': emb,                                            # f32, exact gather
        'win': stack(win), 'bin': stack(bin_), 'wo': stack(wo), 'bo': stack(bo),
        'g1': stack(g1), 'be1': stack(be1), 'w1': stack(w1), 'b1': stack(b1),
        'w2': stack(w2), 'b2': stack(b2), 'g2': stack(g2), 'be2': stack(be2),
        'wfc': wfc, 'bfc': bfc,
    }


if __name__ == "__main__":
    vocab_size, embed_size, num_heads, hidden_dim, num_layers = 64, 32, 4, 64, 2
    seq_len, batch = 8, 2

    key = jax.random.PRNGKey(0)
    pkey, dkey = jax.random.split(key)
    torch_params = init_params(pkey, vocab_size, embed_size, num_heads,
                               hidden_dim, num_layers)
    kparams = prepare_params(torch_params, num_heads)
    src = jax.random.randint(dkey, (seq_len, batch), 0, vocab_size,
                             dtype=jnp.int32)

    out = transformer_forward(src, kparams, num_heads)
    out = jax.block_until_ready(out)

    assert out.shape == (seq_len, batch, vocab_size), out.shape
    assert out.dtype == jnp.float32
    assert bool(jnp.all(jnp.isfinite(out)))
    print("KERNEL_OK")
</pallas_src>

<mosaic_0001>
module attributes {stable_mosaic.version = 11 : i64} {
  func.func @transformer_kernel(%arg0: i32, %arg1: memref<16xi32, #tpu.memory_space<smem>>, %arg2: memref<64x32xf32, #tpu.memory_space<vmem>>, %arg3: memref<2x32x96xbf16, #tpu.memory_space<vmem>>, %arg4: memref<2x1x96xf32, #tpu.memory_space<vmem>>, %arg5: memref<2x32x32xbf16, #tpu.memory_space<vmem>>, %arg6: memref<2x1x32xf32, #tpu.memory_space<vmem>>, %arg7: memref<2x1x32xf32, #tpu.memory_space<vmem>>, %arg8: memref<2x1x32xf32, #tpu.memory_space<vmem>>, %arg9: memref<2x32x64xbf16, #tpu.memory_space<vmem>>, %arg10: memref<2x1x64xf32, #tpu.memory_space<vmem>>, %arg11: memref<2x64x32xbf16, #tpu.memory_space<vmem>>, %arg12: memref<2x1x32xf32, #tpu.memory_space<vmem>>, %arg13: memref<2x1x32xf32, #tpu.memory_space<vmem>>, %arg14: memref<2x1x32xf32, #tpu.memory_space<vmem>>, %arg15: memref<32x128xbf16, #tpu.memory_space<vmem>>, %arg16: memref<1x128xf32, #tpu.memory_space<vmem>>, %arg17: memref<8x128xf32, #tpu.memory_space<vmem>>, %arg18: memref<8x32xf32, #tpu.memory_space<vmem>>) attributes {dimension_semantics = [#tpu.dimension_semantics<parallel>], iteration_bounds = array<i64: 2>, scalar_prefetch = 0 : i64, scratch_operands = 1 : i64, tpu.core_type = #tpu.core_type<tc>, window_params = [{transform_indices = @transform_0, window_bounds = array<i64: 16>}, {pipeline_mode = #tpu.pipeline_mode<synchronous>, transform_indices = @transform_1, window_bounds = array<i64: 64, 32>}, {pipeline_mode = #tpu.pipeline_mode<synchronous>, transform_indices = @transform_2, window_bounds = array<i64: 2, 32, 96>}, {pipeline_mode = #tpu.pipeline_mode<synchronous>, transform_indices = @transform_3, window_bounds = array<i64: 2, 1, 96>}, {pipeline_mode = #tpu.pipeline_mode<synchronous>, transform_indices = @transform_4, window_bounds = array<i64: 2, 32, 32>}, {pipeline_mode = #tpu.pipeline_mode<synchronous>, transform_indices = @transform_5, window_bounds = array<i64: 2, 1, 32>}, {pipeline_mode = #tpu.pipeline_mode<synchronous>, transform_indices = @transform_6, window_bounds = array<i64: 2, 1, 32>}, {pipeline_mode = #tpu.pipeline_mode<synchronous>, transform_indices = @transform_7, window_bounds = array<i64: 2, 1, 32>}, {pipeline_mode = #tpu.pipeline_mode<synchronous>, transform_indices = @transform_8, window_bounds = array<i64: 2, 32, 64>}, {pipeline_mode = #tpu.pipeline_mode<synchronous>, transform_indices = @transform_9, window_bounds = array<i64: 2, 1, 64>}, {pipeline_mode = #tpu.pipeline_mode<synchronous>, transform_indices = @transform_10, window_bounds = array<i64: 2, 64, 32>}, {pipeline_mode = #tpu.pipeline_mode<synchronous>, transform_indices = @transform_11, window_bounds = array<i64: 2, 1, 32>}, {pipeline_mode = #tpu.pipeline_mode<synchronous>, transform_indices = @transform_12, window_bounds = array<i64: 2, 1, 32>}, {pipeline_mode = #tpu.pipeline_mode<synchronous>, transform_indices = @transform_13, window_bounds = array<i64: 2, 1, 32>}, {pipeline_mode = #tpu.pipeline_mode<synchronous>, transform_indices = @transform_14, window_bounds = array<i64: 32, 128>}, {pipeline_mode = #tpu.pipeline_mode<synchronous>, transform_indices = @transform_15, window_bounds = array<i64: 1, 128>}, {transform_indices = @transform_16, window_bounds = array<i64: 8, 128>}]} {
    %c8_i32 = arith.constant 8 : i32
    %0 = arith.muli %arg0, %c8_i32 : i32
    %c0_i32 = arith.constant 0 : i32
    %1 = arith.addi %0, %c0_i32 : i32
    %2 = arith.index_cast %1 : i32 to index
    %3 = memref.load %arg1[%2] : memref<16xi32, #tpu.memory_space<smem>>
    %4 = arith.index_cast %3 : i32 to index
    %c0 = arith.constant 0 : index
    %5 = vector.load %arg2[%4, %c0] : memref<64x32xf32, #tpu.memory_space<vmem>>, vector<1x32xf32>
    %c0_0 = arith.constant 0 : index
    %c0_1 = arith.constant 0 : index
    %6 = vector.load %arg18[%c0_0, %c0_1] : memref<8x32xf32, #tpu.memory_space<vmem>>, vector<1x32xf32>
    tpu.vector_store %arg18[%c0_0, %c0_1], %5 {strides = array<i32>} : memref<8x32xf32, #tpu.memory_space<vmem>>, vector<1x32xf32>,
    %c8_i32_2 = arith.constant 8 : i32
    %7 = arith.muli %arg0, %c8_i32_2 : i32
    %c1_i32 = arith.constant 1 : i32
    %8 = arith.addi %7, %c1_i32 : i32
    %9 = arith.index_cast %8 : i32 to index
    %10 = memref.load %arg1[%9] : memref<16xi32, #tpu.memory_space<smem>>
    %11 = arith.index_cast %10 : i32 to index
    %c0_3 = arith.constant 0 : index
    %12 = vector.load %arg2[%11, %c0_3] : memref<64x32xf32, #tpu.memory_space<vmem>>, vector<1x32xf32>
    %c1 = arith.constant 1 : index
    %c0_4 = arith.constant 0 : index
    %13 = vector.load %arg18[%c1, %c0_4] : memref<8x32xf32, #tpu.memory_space<vmem>>, vector<1x32xf32>
    tpu.vector_store %arg18[%c1, %c0_4], %12 {strides = array<i32>} : memref<8x32xf32, #tpu.memory_space<vmem>>, vector<1x32xf32>,
    %c8_i32_5 = arith.constant 8 : i32
    %14 = arith.muli %arg0, %c8_i32_5 : i32
    %c2_i32 = arith.constant 2 : i32
    %15 = arith.addi %14, %c2_i32 : i32
    %16 = arith.index_cast %15 : i32 to index
    %17 = memref.load %arg1[%16] : memref<16xi32, #tpu.memory_space<smem>>
    %18 = arith.index_cast %17 : i32 to index
    %c0_6 = arith.constant 0 : index
    %19 = vector.load %arg2[%18, %c0_6] : memref<64x32xf32, #tpu.memory_space<vmem>>, vector<1x32xf32>
    %c2 = arith.constant 2 : index
    %c0_7 = arith.constant 0 : index
    %20 = vector.load %arg18[%c2, %c0_7] : memref<8x32xf32, #tpu.memory_space<vmem>>, vector<1x32xf32>
    tpu.vector_store %arg18[%c2, %c0_7], %19 {strides = array<i32>} : memref<8x32xf32, #tpu.memory_space<vmem>>, vector<1x32xf32>,
    %c8_i32_8 = arith.constant 8 : i32
    %21 = arith.muli %arg0, %c8_i32_8 : i32
    %c3_i32 = arith.constant 3 : i32
    %22 = arith.addi %21, %c3_i32 : i32
    %23 = arith.index_cast %22 : i32 to index
    %24 = memref.load %arg1[%23] : memref<16xi32, #tpu.memory_space<smem>>
    %25 = arith.index_cast %24 : i32 to index
    %c0_9 = arith.constant 0 : index
    %26 = vector.load %arg2[%25, %c0_9] : memref<64x32xf32, #tpu.memory_space<vmem>>, vector<1x32xf32>
    %c3 = arith.constant 3 : index
    %c0_10 = arith.constant 0 : index
    %27 = vector.load %arg18[%c3, %c0_10] : memref<8x32xf32, #tpu.memory_space<vmem>>, vector<1x32xf32>
    tpu.vector_store %arg18[%c3, %c0_10], %26 {strides = array<i32>} : memref<8x32xf32, #tpu.memory_space<vmem>>, vector<1x32xf32>,
    %c8_i32_11 = arith.constant 8 : i32
    %28 = arith.muli %arg0, %c8_i32_11 : i32
    %c4_i32 = arith.constant 4 : i32
    %29 = arith.addi %28, %c4_i32 : i32
    %30 = arith.index_cast %29 : i32 to index
    %31 = memref.load %arg1[%30] : memref<16xi32, #tpu.memory_space<smem>>
    %32 = arith.index_cast %31 : i32 to index
    %c0_12 = arith.constant 0 : index
    %33 = vector.load %arg2[%32, %c0_12] : memref<64x32xf32, #tpu.memory_space<vmem>>, vector<1x32xf32>
    %c4 = arith.constant 4 : index
    %c0_13 = arith.constant 0 : index
    %34 = vector.load %arg18[%c4, %c0_13] : memref<8x32xf32, #tpu.memory_space<vmem>>, vector<1x32xf32>
    tpu.vector_store %arg18[%c4, %c0_13], %33 {strides = array<i32>} : memref<8x32xf32, #tpu.memory_space<vmem>>, vector<1x32xf32>,
    %c8_i32_14 = arith.constant 8 : i32
    %35 = arith.muli %arg0, %c8_i32_14 : i32
    %c5_i32 = arith.constant 5 : i32
    %36 = arith.addi %35, %c5_i32 : i32
    %37 = arith.index_cast %36 : i32 to index
    %38 = memref.load %arg1[%37] : memref<16xi32, #tpu.memory_space<smem>>
    %39 = arith.index_cast %38 : i32 to index
    %c0_15 = arith.constant 0 : index
    %40 = vector.load %arg2[%39, %c0_15] : memref<64x32xf32, #tpu.memory_space<vmem>>, vector<1x32xf32>
    %c5 = arith.constant 5 : index
    %c0_16 = arith.constant 0 : index
    %41 = vector.load %arg18[%c5, %c0_16] : memref<8x32xf32, #tpu.memory_space<vmem>>, vector<1x32xf32>
    tpu.vector_store %arg18[%c5, %c0_16], %40 {strides = array<i32>} : memref<8x32xf32, #tpu.memory_space<vmem>>, vector<1x32xf32>,
    %c8_i32_17 = arith.constant 8 : i32
    %42 = arith.muli %arg0, %c8_i32_17 : i32
    %c6_i32 = arith.constant 6 : i32
    %43 = arith.addi %42, %c6_i32 : i32
    %44 = arith.index_cast %43 : i32 to index
    %45 = memref.load %arg1[%44] : memref<16xi32, #tpu.memory_space<smem>>
    %46 = arith.index_cast %45 : i32 to index
    %c0_18 = arith.constant 0 : index
    %47 = vector.load %arg2[%46, %c0_18] : memref<64x32xf32, #tpu.memory_space<vmem>>, vector<1x32xf32>
    %c6 = arith.constant 6 : index
    %c0_19 = arith.constant 0 : index
    %48 = vector.load %arg18[%c6, %c0_19] : memref<8x32xf32, #tpu.memory_space<vmem>>, vector<1x32xf32>
    tpu.vector_store %arg18[%c6, %c0_19], %47 {strides = array<i32>} : memref<8x32xf32, #tpu.memory_space<vmem>>, vector<1x32xf32>,
    %c8_i32_20 = arith.constant 8 : i32
    %49 = arith.muli %arg0, %c8_i32_20 : i32
    %c7_i32 = arith.constant 7 : i32
    %50 = arith.addi %49, %c7_i32 : i32
    %51 = arith.index_cast %50 : i32 to index
    %52 = memref.load %arg1[%51] : memref<16xi32, #tpu.memory_space<smem>>
    %53 = arith.index_cast %52 : i32 to index
    %c0_21 = arith.constant 0 : index
    %54 = vector.load %arg2[%53, %c0_21] : memref<64x32xf32, #tpu.memory_space<vmem>>, vector<1x32xf32>
    %c7 = arith.constant 7 : index
    %c0_22 = arith.constant 0 : index
    %55 = vector.load %arg18[%c7, %c0_22] : memref<8x32xf32, #tpu.memory_space<vmem>>, vector<1x32xf32>
    tpu.vector_store %arg18[%c7, %c0_22], %54 {strides = array<i32>} : memref<8x32xf32, #tpu.memory_space<vmem>>, vector<1x32xf32>,
    %c0_23 = arith.constant 0 : index
    %c0_24 = arith.constant 0 : index
    %56 = vector.load %arg18[%c0_23, %c0_24] : memref<8x32xf32, #tpu.memory_space<vmem>>, vector<8x32xf32>
    %57 = arith.truncf %56 : vector<8x32xf32> to vector<8x32xbf16>
    %c0_25 = arith.constant 0 : index
    %c0_26 = arith.constant 0 : index
    %c0_27 = arith.constant 0 : index
    %58 = vector.load %arg3[%c0_25, %c0_26, %c0_27] : memref<2x32x96xbf16, #tpu.memory_space<vmem>>, vector<1x32x96xbf16>
    %59 = vector.shape_cast %58 : vector<1x32x96xbf16> to vector<32x96xbf16>
    %cst = arith.constant dense<0.000000e+00> : vector<8x96xf32>
    %60 = tpu.matmul %57, %59, %cst {dimension_numbers = #tpu.dot_dimension_numbers<[1], [0], [0], [1], [0, 0, 1, 1], [], []>} : vector<8x32xbf16>, vector<32x96xbf16>, vector<8x96xf32> -> vector<8x96xf32>
    %c0_28 = arith.constant 0 : index
    %c0_29 = arith.constant 0 : index
    %c0_30 = arith.constant 0 : index
    %61 = vector.load %arg4[%c0_28, %c0_29, %c0_30] : memref<2x1x96xf32, #tpu.memory_space<vmem>>, vector<1x1x96xf32>
    %62 = vector.shape_cast %61 : vector<1x1x96xf32> to vector<1x96xf32>
    %63 = vector.broadcast %62 : vector<1x96xf32> to vector<8x96xf32>
    %64 = arith.addf %60, %63 : vector<8x96xf32>
    %65 = vector.extract_strided_slice %64 {offsets = [0, 0], sizes = [8, 8], strides = [1, 1]} : vector<8x96xf32> to vector<8x8xf32>
    %66 = vector.extract_strided_slice %64 {offsets = [0, 8], sizes = [8, 8], strides = [1, 1]} : vector<8x96xf32> to vector<8x8xf32>
    %67 = vector.extract_strided_slice %64 {offsets = [0, 16], sizes = [8, 8], strides = [1, 1]} : vector<8x96xf32> to vector<8x8xf32>
    %68 = vector.extract_strided_slice %64 {offsets = [0, 24], sizes = [8, 8], strides = [1, 1]} : vector<8x96xf32> to vector<8x8xf32>
    %69 = vector.shape_cast %65 : vector<8x8xf32> to vector<1x8x8xf32>
    %70 = vector.shape_cast %66 : vector<8x8xf32> to vector<1x8x8xf32>
    %71 = vector.shape_cast %67 : vector<8x8xf32> to vector<1x8x8xf32>
    %72 = vector.shape_cast %68 : vector<8x8xf32> to vector<1x8x8xf32>
    %73 = tpu.concatenate %69, %70, %71, %72 in 0 : vector<1x8x8xf32>, vector<1x8x8xf32>, vector<1x8x8xf32>, vector<1x8x8xf32> -> vector<4x8x8xf32>
    %74 = arith.truncf %73 : vector<4x8x8xf32> to vector<4x8x8xbf16>
    %75 = vector.extract_strided_slice %64 {offsets = [0, 32], sizes = [8, 8], strides = [1, 1]} : vector<8x96xf32> to vector<8x8xf32>
    %76 = vector.extract_strided_slice %64 {offsets = [0, 40], sizes = [8, 8], strides = [1, 1]} : vector<8x96xf32> to vector<8x8xf32>
    %77 = vector.extract_strided_slice %64 {offsets = [0, 48], sizes = [8, 8], strides = [1, 1]} : vector<8x96xf32> to vector<8x8xf32>
    %78 = vector.extract_strided_slice %64 {offsets = [0, 56], sizes = [8, 8], strides = [1, 1]} : vector<8x96xf32> to vector<8x8xf32>
    %79 = vector.shape_cast %75 : vector<8x8xf32> to vector<1x8x8xf32>
    %80 = vector.shape_cast %76 : vector<8x8xf32> to vector<1x8x8xf32>
    %81 = vector.shape_cast %77 : vector<8x8xf32> to vector<1x8x8xf32>
    %82 = vector.shape_cast %78 : vector<8x8xf32> to vector<1x8x8xf32>
    %83 = tpu.concatenate %79, %80, %81, %82 in 0 : vector<1x8x8xf32>, vector<1x8x8xf32>, vector<1x8x8xf32>, vector<1x8x8xf32> -> vector<4x8x8xf32>
    %84 = arith.truncf %83 : vector<4x8x8xf32> to vector<4x8x8xbf16>
    %85 = vector.extract_strided_slice %64 {offsets = [0, 64], sizes = [8, 8], strides = [1, 1]} : vector<8x96xf32> to vector<8x8xf32>
    %86 = vector.extract_strided_slice %64 {offsets = [0, 72], sizes = [8, 8], strides = [1, 1]} : vector<8x96xf32> to vector<8x8xf32>
    %87 = vector.extract_strided_slice %64 {offsets = [0, 80], sizes = [8, 8], strides = [1, 1]} : vector<8x96xf32> to vector<8x8xf32>
    %88 = vector.extract_strided_slice %64 {offsets = [0, 88], sizes = [8, 8], strides = [1, 1]} : vector<8x96xf32> to vector<8x8xf32>
    %89 = vector.shape_cast %85 : vector<8x8xf32> to vector<1x8x8xf32>
    %90 = vector.shape_cast %86 : vector<8x8xf32> to vector<1x8x8xf32>
    %91 = vector.shape_cast %87 : vector<8x8xf32> to vector<1x8x8xf32>
    %92 = vector.shape_cast %88 : vector<8x8xf32> to vector<1x8x8xf32>
    %93 = tpu.concatenate %89, %90, %91, %92 in 0 : vector<1x8x8xf32>, vector<1x8x8xf32>, vector<1x8x8xf32>, vector<1x8x8xf32> -> vector<4x8x8xf32>
    %94 = arith.truncf %93 : vector<4x8x8xf32> to vector<4x8x8xbf16>
    "tpu.trace_start"() <{level = 10 : i32, message = "hqd,hkd->hqk"}> : () -> ()
    %cst_31 = arith.constant dense<0.000000e+00> : vector<4x8x8xf32>
    %95 = tpu.matmul %74, %84, %cst_31 {dimension_numbers = #tpu.dot_dimension_numbers<[2], [2], [1], [1], [0, 0, 0, 1, 1, 1], [0], [0]>} : vector<4x8x8xbf16>, vector<4x8x8xbf16>, vector<4x8x8xf32> -> vector<4x8x8xf32>
    "tpu.trace_stop"() : () -> ()
    %cst_32 = arith.constant dense<0xFF800000> : vector<4x8xf32>
    %96 = vector.multi_reduction <maximumf>, %95, %cst_32 [2] : vector<4x8x8xf32> to vector<4x8xf32>
    %97 = vector.shape_cast %96 : vector<4x8xf32> to vector<4x8x1xf32>
    %98 = vector.broadcast %97 : vector<4x8x1xf32> to vector<4x8x8xf32>
    %99 = arith.subf %95, %98 : vector<4x8x8xf32>
    %100 = math.exp %99 : vector<4x8x8xf32>
    %cst_33 = arith.constant dense<0.000000e+00> : vector<4x8xf32>
    %101 = vector.multi_reduction <add>, %100, %cst_33 [2] : vector<4x8x8xf32> to vector<4x8xf32>
    %102 = vector.shape_cast %101 : vector<4x8xf32> to vector<4x8x1xf32>
    %103 = tpu.reciprocal %102 {approx = true} : vector<4x8x1xf32> -> vector<4x8x1xf32>
    %104 = vector.broadcast %103 : vector<4x8x1xf32> to vector<4x8x8xf32>
    %105 = arith.mulf %100, %104 : vector<4x8x8xf32>
    %106 = arith.truncf %105 : vector<4x8x8xf32> to vector<4x8x8xbf16>
    "tpu.trace_start"() <{level = 10 : i32, message = "hqk,hkd->hqd"}> : () -> ()
    %cst_34 = arith.constant dense<0.000000e+00> : vector<4x8x8xf32>
    %107 = tpu.matmul %106, %94, %cst_34 {dimension_numbers = #tpu.dot_dimension_numbers<[2], [1], [1], [2], [0, 0, 0, 1, 1, 2], [0], [0]>} : vector<4x8x8xbf16>, vector<4x8x8xbf16>, vector<4x8x8xf32> -> vector<4x8x8xf32>
    "tpu.trace_stop"() : () -> ()
    %108 = vector.extract_strided_slice %107 {offsets = [0, 0, 0], sizes = [1, 8, 8], strides = [1, 1, 1]} : vector<4x8x8xf32> to vector<1x8x8xf32>
    %109 = vector.shape_cast %108 : vector<1x8x8xf32> to vector<8x8xf32>
    %110 = vector.extract_strided_slice %107 {offsets = [1, 0, 0], sizes = [1, 8, 8], strides = [1, 1, 1]} : vector<4x8x8xf32> to vector<1x8x8xf32>
    %111 = vector.shape_cast %110 : vector<1x8x8xf32> to vector<8x8xf32>
    %112 = vector.extract_strided_slice %107 {offsets = [2, 0, 0], sizes = [1, 8, 8], strides = [1, 1, 1]} : vector<4x8x8xf32> to vector<1x8x8xf32>
    %113 = vector.shape_cast %112 : vector<1x8x8xf32> to vector<8x8xf32>
    %114 = vector.extract_strided_slice %107 {offsets = [3, 0, 0], sizes = [1, 8, 8], strides = [1, 1, 1]} : vector<4x8x8xf32> to vector<1x8x8xf32>
    %115 = vector.shape_cast %114 : vector<1x8x8xf32> to vector<8x8xf32>
    %116 = tpu.concatenate %109, %111, %113, %115 in 1 : vector<8x8xf32>, vector<8x8xf32>, vector<8x8xf32>, vector<8x8xf32> -> vector<8x32xf32>
    %117 = arith.truncf %116 : vector<8x32xf32> to vector<8x32xbf16>
    %c0_35 = arith.constant 0 : index
    %c0_36 = arith.constant 0 : index
    %c0_37 = arith.constant 0 : index
    %118 = vector.load %arg5[%c0_35, %c0_36, %c0_37] : memref<2x32x32xbf16, #tpu.memory_space<vmem>>, vector<1x32x32xbf16>
    %119 = vector.shape_cast %118 : vector<1x32x32xbf16> to vector<32x32xbf16>
    %cst_38 = arith.constant dense<0.000000e+00> : vector<8x32xf32>
    %120 = tpu.matmul %117, %119, %cst_38 {dimension_numbers = #tpu.dot_dimension_numbers<[1], [0], [0], [1], [0, 0, 1, 1], [], []>} : vector<8x32xbf16>, vector<32x32xbf16>, vector<8x32xf32> -> vector<8x32xf32>
    %c0_39 = arith.constant 0 : index
    %c0_40 = arith.constant 0 : index
    %c0_41 = arith.constant 0 : index
    %121 = vector.load %arg6[%c0_39, %c0_40, %c0_41] : memref<2x1x32xf32, #tpu.memory_space<vmem>>, vector<1x1x32xf32>
    %122 = vector.shape_cast %121 : vector<1x1x32xf32> to vector<1x32xf32>
    %123 = vector.broadcast %122 : vector<1x32xf32> to vector<8x32xf32>
    %124 = arith.addf %120, %123 : vector<8x32xf32>
    %125 = arith.addf %56, %124 : vector<8x32xf32>
    %c0_42 = arith.constant 0 : index
    %c0_43 = arith.constant 0 : index
    %c0_44 = arith.constant 0 : index
    %126 = vector.load %arg7[%c0_42, %c0_43, %c0_44] : memref<2x1x32xf32, #tpu.memory_space<vmem>>, vector<1x1x32xf32>
    %127 = vector.shape_cast %126 : vector<1x1x32xf32> to vector<1x32xf32>
    %c0_45 = arith.constant 0 : index
    %c0_46 = arith.constant 0 : index
    %c0_47 = arith.constant 0 : index
    %128 = vector.load %arg8[%c0_45, %c0_46, %c0_47] : memref<2x1x32xf32, #tpu.memory_space<vmem>>, vector<1x1x32xf32>
    %129 = vector.shape_cast %128 : vector<1x1x32xf32> to vector<1x32xf32>
    %cst_48 = arith.constant dense<0.000000e+00> : vector<8xf32>
    %130 = vector.multi_reduction <add>, %125, %cst_48 [1] : vector<8x32xf32> to vector<8xf32>
    %131 = vector.shape_cast %130 : vector<8xf32> to vector<8x1xf32>
    %cst_49 = arith.constant 3.200000e+01 : f32
    %132 = vector.broadcast %cst_49 : f32 to vector<8x1xf32>
    %133 = arith.divf %131, %132 : vector<8x1xf32>
    %134 = vector.broadcast %133 : vector<8x1xf32> to vector<8x32xf32>
    %135 = arith.subf %125, %134 : vector<8x32xf32>
    %136 = arith.mulf %135, %135 : vector<8x32xf32>
    %cst_50 = arith.constant dense<0.000000e+00> : vector<8xf32>
    %137 = vector.multi_reduction <add>, %136, %cst_50 [1] : vector<8x32xf32> to vector<8xf32>
    %138 = vector.shape_cast %137 : vector<8xf32> to vector<8x1xf32>
    %cst_51 = arith.constant 3.200000e+01 : f32
    %139 = vector.broadcast %cst_51 : f32 to vector<8x1xf32>
    %140 = arith.divf %138, %139 : vector<8x1xf32>
    %141 = vector.broadcast %133 : vector<8x1xf32> to vector<8x32xf32>
    %142 = arith.subf %125, %141 : vector<8x32xf32>
    %cst_52 = arith.constant 9.99999974E-6 : f32
    %143 = vector.broadcast %cst_52 : f32 to vector<8x1xf32>
    %144 = arith.addf %140, %143 : vector<8x1xf32>
    %145 = math.rsqrt %144 : vector<8x1xf32>
    %146 = vector.broadcast %145 : vector<8x1xf32> to vector<8x32xf32>
    %147 = arith.mulf %142, %146 : vector<8x32xf32>
    %148 = vector.broadcast %127 : vector<1x32xf32> to vector<8x32xf32>
    %149 = arith.mulf %147, %148 : vector<8x32xf32>
    %150 = vector.broadcast %129 : vector<1x32xf32> to vector<8x32xf32>
    %151 = arith.addf %149, %150 : vector<8x32xf32>
    %152 = arith.truncf %151 : vector<8x32xf32> to vector<8x32xbf16>
    %c0_53 = arith.constant 0 : index
    %c0_54 = arith.constant 0 : index
    %c0_55 = arith.constant 0 : index
    %153 = vector.load %arg9[%c0_53, %c0_54, %c0_55] : memref<2x32x64xbf16, #tpu.memory_space<vmem>>, vector<1x32x64xbf16>
    %154 = vector.shape_cast %153 : vector<1x32x64xbf16> to vector<32x64xbf16>
    %cst_56 = arith.constant dense<0.000000e+00> : vector<8x64xf32>
    %155 = tpu.matmul %152, %154, %cst_56 {dimension_numbers = #tpu.dot_dimension_numbers<[1], [0], [0], [1], [0, 0, 1, 1], [], []>} : vector<8x32xbf16>, vector<32x64xbf16>, vector<8x64xf32> -> vector<8x64xf32>
    %c0_57 = arith.constant 0 : index
    %c0_58 = arith.constant 0 : index
    %c0_59 = arith.constant 0 : index
    %156 = vector.load %arg10[%c0_57, %c0_58, %c0_59] : memref<2x1x64xf32, #tpu.memory_space<vmem>>, vector<1x1x64xf32>
    %157 = vector.shape_cast %156 : vector<1x1x64xf32> to vector<1x64xf32>
    %158 = vector.broadcast %157 : vector<1x64xf32> to vector<8x64xf32>
    %159 = arith.addf %155, %158 : vector<8x64xf32>
    %cst_60 = arith.constant 0.000000e+00 : f32
    %160 = vector.broadcast %cst_60 : f32 to vector<8x64xf32>
    %161 = arith.maximumf %159, %160 : vector<8x64xf32>
    %162 = arith.truncf %161 : vector<8x64xf32> to vector<8x64xbf16>
    %c0_61 = arith.constant 0 : index
    %c0_62 = arith.constant 0 : index
    %c0_63 = arith.constant 0 : index
    %163 = vector.load %arg11[%c0_61, %c0_62, %c0_63] : memref<2x64x32xbf16, #tpu.memory_space<vmem>>, vector<1x64x32xbf16>
    %164 = vector.shape_cast %163 : vector<1x64x32xbf16> to vector<64x32xbf16>
    %cst_64 = arith.constant dense<0.000000e+00> : vector<8x32xf32>
    %165 = tpu.matmul %162, %164, %cst_64 {dimension_numbers = #tpu.dot_dimension_numbers<[1], [0], [0], [1], [0, 0, 1, 1], [], []>} : vector<8x64xbf16>, vector<64x32xbf16>, vector<8x32xf32> -> vector<8x32xf32>
    %c0_65 = arith.constant 0 : index
    %c0_66 = arith.constant 0 : index
    %c0_67 = arith.constant 0 : index
    %166 = vector.load %arg12[%c0_65, %c0_66, %c0_67] : memref<2x1x32xf32, #tpu.memory_space<vmem>>, vector<1x1x32xf32>
    %167 = vector.shape_cast %166 : vector<1x1x32xf32> to vector<1x32xf32>
    %168 = vector.broadcast %167 : vector<1x32xf32> to vector<8x32xf32>
    %169 = arith.addf %165, %168 : vector<8x32xf32>
    %170 = arith.addf %151, %169 : vector<8x32xf32>
    %c0_68 = arith.constant 0 : index
    %c0_69 = arith.constant 0 : index
    %c0_70 = arith.constant 0 : index
    %171 = vector.load %arg13[%c0_68, %c0_69, %c0_70] : memref<2x1x32xf32, #tpu.memory_space<vmem>>, vector<1x1x32xf32>
    %172 = vector.shape_cast %171 : vector<1x1x32xf32> to vector<1x32xf32>
    %c0_71 = arith.constant 0 : index
    %c0_72 = arith.constant 0 : index
    %c0_73 = arith.constant 0 : index
    %173 = vector.load %arg14[%c0_71, %c0_72, %c0_73] : memref<2x1x32xf32, #tpu.memory_space<vmem>>, vector<1x1x32xf32>
    %174 = vector.shape_cast %173 : vector<1x1x32xf32> to vector<1x32xf32>
    %cst_74 = arith.constant dense<0.000000e+00> : vector<8xf32>
    %175 = vector.multi_reduction <add>, %170, %cst_74 [1] : vector<8x32xf32> to vector<8xf32>
    %176 = vector.shape_cast %175 : vector<8xf32> to vector<8x1xf32>
    %cst_75 = arith.constant 3.200000e+01 : f32
    %177 = vector.broadcast %cst_75 : f32 to vector<8x1xf32>
    %178 = arith.divf %176, %177 : vector<8x1xf32>
    %179 = vector.broadcast %178 : vector<8x1xf32> to vector<8x32xf32>
    %180 = arith.subf %170, %179 : vector<8x32xf32>
    %181 = arith.mulf %180, %180 : vector<8x32xf32>
    %cst_76 = arith.constant dense<0.000000e+00> : vector<8xf32>
    %182 = vector.multi_reduction <add>, %181, %cst_76 [1] : vector<8x32xf32> to vector<8xf32>
    %183 = vector.shape_cast %182 : vector<8xf32> to vector<8x1xf32>
    %cst_77 = arith.constant 3.200000e+01 : f32
    %184 = vector.broadcast %cst_77 : f32 to vector<8x1xf32>
    %185 = arith.divf %183, %184 : vector<8x1xf32>
    %186 = vector.broadcast %178 : vector<8x1xf32> to vector<8x32xf32>
    %187 = arith.subf %170, %186 : vector<8x32xf32>
    %cst_78 = arith.constant 9.99999974E-6 : f32
    %188 = vector.broadcast %cst_78 : f32 to vector<8x1xf32>
    %189 = arith.addf %185, %188 : vector<8x1xf32>
    %190 = math.rsqrt %189 : vector<8x1xf32>
    %191 = vector.broadcast %190 : vector<8x1xf32> to vector<8x32xf32>
    %192 = arith.mulf %187, %191 : vector<8x32xf32>
    %193 = vector.broadcast %172 : vector<1x32xf32> to vector<8x32xf32>
    %194 = arith.mulf %192, %193 : vector<8x32xf32>
    %195 = vector.broadcast %174 : vector<1x32xf32> to vector<8x32xf32>
    %196 = arith.addf %194, %195 : vector<8x32xf32>
    %197 = arith.truncf %196 : vector<8x32xf32> to vector<8x32xbf16>
    %c1_79 = arith.constant 1 : index
    %c0_80 = arith.constant 0 : index
    %c0_81 = arith.constant 0 : index
    %198 = vector.load %arg3[%c1_79, %c0_80, %c0_81] : memref<2x32x96xbf16, #tpu.memory_space<vmem>>, vector<1x32x96xbf16>
    %199 = vector.shape_cast %198 : vector<1x32x96xbf16> to vector<32x96xbf16>
    %cst_82 = arith.constant dense<0.000000e+00> : vector<8x96xf32>
    %200 = tpu.matmul %197, %199, %cst_82 {dimension_numbers = #tpu.dot_dimension_numbers<[1], [0], [0], [1], [0, 0, 1, 1], [], []>} : vector<8x32xbf16>, vector<32x96xbf16>, vector<8x96xf32> -> vector<8x96xf32>
    %c1_83 = arith.constant 1 : index
    %c0_84 = arith.constant 0 : index
    %c0_85 = arith.constant 0 : index
    %201 = vector.load %arg4[%c1_83, %c0_84, %c0_85] : memref<2x1x96xf32, #tpu.memory_space<vmem>>, vector<1x1x96xf32>
    %202 = vector.shape_cast %201 : vector<1x1x96xf32> to vector<1x96xf32>
    %203 = vector.broadcast %202 : vector<1x96xf32> to vector<8x96xf32>
    %204 = arith.addf %200, %203 : vector<8x96xf32>
    %205 = vector.extract_strided_slice %204 {offsets = [0, 0], sizes = [8, 8], strides = [1, 1]} : vector<8x96xf32> to vector<8x8xf32>
    %206 = vector.extract_strided_slice %204 {offsets = [0, 8], sizes = [8, 8], strides = [1, 1]} : vector<8x96xf32> to vector<8x8xf32>
    %207 = vector.extract_strided_slice %204 {offsets = [0, 16], sizes = [8, 8], strides = [1, 1]} : vector<8x96xf32> to vector<8x8xf32>
    %208 = vector.extract_strided_slice %204 {offsets = [0, 24], sizes = [8, 8], strides = [1, 1]} : vector<8x96xf32> to vector<8x8xf32>
    %209 = vector.shape_cast %205 : vector<8x8xf32> to vector<1x8x8xf32>
    %210 = vector.shape_cast %206 : vector<8x8xf32> to vector<1x8x8xf32>
    %211 = vector.shape_cast %207 : vector<8x8xf32> to vector<1x8x8xf32>
    %212 = vector.shape_cast %208 : vector<8x8xf32> to vector<1x8x8xf32>
    %213 = tpu.concatenate %209, %210, %211, %212 in 0 : vector<1x8x8xf32>, vector<1x8x8xf32>, vector<1x8x8xf32>, vector<1x8x8xf32> -> vector<4x8x8xf32>
    %214 = arith.truncf %213 : vector<4x8x8xf32> to vector<4x8x8xbf16>
    %215 = vector.extract_strided_slice %204 {offsets = [0, 32], sizes = [8, 8], strides = [1, 1]} : vector<8x96xf32> to vector<8x8xf32>
    %216 = vector.extract_strided_slice %204 {offsets = [0, 40], sizes = [8, 8], strides = [1, 1]} : vector<8x96xf32> to vector<8x8xf32>
    %217 = vector.extract_strided_slice %204 {offsets = [0, 48], sizes = [8, 8], strides = [1, 1]} : vector<8x96xf32> to vector<8x8xf32>
    %218 = vector.extract_strided_slice %204 {offsets = [0, 56], sizes = [8, 8], strides = [1, 1]} : vector<8x96xf32> to vector<8x8xf32>
    %219 = vector.shape_cast %215 : vector<8x8xf32> to vector<1x8x8xf32>
    %220 = vector.shape_cast %216 : vector<8x8xf32> to vector<1x8x8xf32>
    %221 = vector.shape_cast %217 : vector<8x8xf32> to vector<1x8x8xf32>
    %222 = vector.shape_cast %218 : vector<8x8xf32> to vector<1x8x8xf32>
    %223 = tpu.concatenate %219, %220, %221, %222 in 0 : vector<1x8x8xf32>, vector<1x8x8xf32>, vector<1x8x8xf32>, vector<1x8x8xf32> -> vector<4x8x8xf32>
    %224 = arith.truncf %223 : vector<4x8x8xf32> to vector<4x8x8xbf16>
    %225 = vector.extract_strided_slice %204 {offsets = [0, 64], sizes = [8, 8], strides = [1, 1]} : vector<8x96xf32> to vector<8x8xf32>
    %226 = vector.extract_strided_slice %204 {offsets = [0, 72], sizes = [8, 8], strides = [1, 1]} : vector<8x96xf32> to vector<8x8xf32>
    %227 = vector.extract_strided_slice %204 {offsets = [0, 80], sizes = [8, 8], strides = [1, 1]} : vector<8x96xf32> to vector<8x8xf32>
    %228 = vector.extract_strided_slice %204 {offsets = [0, 88], sizes = [8, 8], strides = [1, 1]} : vector<8x96xf32> to vector<8x8xf32>
    %229 = vector.shape_cast %225 : vector<8x8xf32> to vector<1x8x8xf32>
    %230 = vector.shape_cast %226 : vector<8x8xf32> to vector<1x8x8xf32>
    %231 = vector.shape_cast %227 : vector<8x8xf32> to vector<1x8x8xf32>
    %232 = vector.shape_cast %228 : vector<8x8xf32> to vector<1x8x8xf32>
    %233 = tpu.concatenate %229, %230, %231, %232 in 0 : vector<1x8x8xf32>, vector<1x8x8xf32>, vector<1x8x8xf32>, vector<1x8x8xf32> -> vector<4x8x8xf32>
    %234 = arith.truncf %233 : vector<4x8x8xf32> to vector<4x8x8xbf16>
    "tpu.trace_start"() <{level = 10 : i32, message = "hqd,hkd->hqk"}> : () -> ()
    %cst_86 = arith.constant dense<0.000000e+00> : vector<4x8x8xf32>
    %235 = tpu.matmul %214, %224, %cst_86 {dimension_numbers = #tpu.dot_dimension_numbers<[2], [2], [1], [1], [0, 0, 0, 1, 1, 1], [0], [0]>} : vector<4x8x8xbf16>, vector<4x8x8xbf16>, vector<4x8x8xf32> -> vector<4x8x8xf32>
    "tpu.trace_stop"() : () -> ()
    %cst_87 = arith.constant dense<0xFF800000> : vector<4x8xf32>
    %236 = vector.multi_reduction <maximumf>, %235, %cst_87 [2] : vector<4x8x8xf32> to vector<4x8xf32>
    %237 = vector.shape_cast %236 : vector<4x8xf32> to vector<4x8x1xf32>
    %238 = vector.broadcast %237 : vector<4x8x1xf32> to vector<4x8x8xf32>
    %239 = arith.subf %235, %238 : vector<4x8x8xf32>
    %240 = math.exp %239 : vector<4x8x8xf32>
    %cst_88 = arith.constant dense<0.000000e+00> : vector<4x8xf32>
    %241 = vector.multi_reduction <add>, %240, %cst_88 [2] : vector<4x8x8xf32> to vector<4x8xf32>
    %242 = vector.shape_cast %241 : vector<4x8xf32> to vector<4x8x1xf32>
    %243 = tpu.reciprocal %242 {approx = true} : vector<4x8x1xf32> -> vector<4x8x1xf32>
    %244 = vector.broadcast %243 : vector<4x8x1xf32> to vector<4x8x8xf32>
    %245 = arith.mulf %240, %244 : vector<4x8x8xf32>
    %246 = arith.truncf %245 : vector<4x8x8xf32> to vector<4x8x8xbf16>
    "tpu.trace_start"() <{level = 10 : i32, message = "hqk,hkd->hqd"}> : () -> ()
    %cst_89 = arith.constant dense<0.000000e+00> : vector<4x8x8xf32>
    %247 = tpu.matmul %246, %234, %cst_89 {dimension_numbers = #tpu.dot_dimension_numbers<[2], [1], [1], [2], [0, 0, 0, 1, 1, 2], [0], [0]>} : vector<4x8x8xbf16>, vector<4x8x8xbf16>, vector<4x8x8xf32> -> vector<4x8x8xf32>
    "tpu.trace_stop"() : () -> ()
    %248 = vector.extract_strided_slice %247 {offsets = [0, 0, 0], sizes = [1, 8, 8], strides = [1, 1, 1]} : vector<4x8x8xf32> to vector<1x8x8xf32>
    %249 = vector.shape_cast %248 : vector<1x8x8xf32> to vector<8x8xf32>
    %250 = vector.extract_strided_slice %247 {offsets = [1, 0, 0], sizes = [1, 8, 8], strides = [1, 1, 1]} : vector<4x8x8xf32> to vector<1x8x8xf32>
    %251 = vector.shape_cast %250 : vector<1x8x8xf32> to vector<8x8xf32>
    %252 = vector.extract_strided_slice %247 {offsets = [2, 0, 0], sizes = [1, 8, 8], strides = [1, 1, 1]} : vector<4x8x8xf32> to vector<1x8x8xf32>
    %253 = vector.shape_cast %252 : vector<1x8x8xf32> to vector<8x8xf32>
    %254 = vector.extract_strided_slice %247 {offsets = [3, 0, 0], sizes = [1, 8, 8], strides = [1, 1, 1]} : vector<4x8x8xf32> to vector<1x8x8xf32>
    %255 = vector.shape_cast %254 : vector<1x8x8xf32> to vector<8x8xf32>
    %256 = tpu.concatenate %249, %251, %253, %255 in 1 : vector<8x8xf32>, vector<8x8xf32>, vector<8x8xf32>, vector<8x8xf32> -> vector<8x32xf32>
    %257 = arith.truncf %256 : vector<8x32xf32> to vector<8x32xbf16>
    %c1_90 = arith.constant 1 : index
    %c0_91 = arith.constant 0 : index
    %c0_92 = arith.constant 0 : index
    %258 = vector.load %arg5[%c1_90, %c0_91, %c0_92] : memref<2x32x32xbf16, #tpu.memory_space<vmem>>, vector<1x32x32xbf16>
    %259 = vector.shape_cast %258 : vector<1x32x32xbf16> to vector<32x32xbf16>
    %cst_93 = arith.constant dense<0.000000e+00> : vector<8x32xf32>
    %260 = tpu.matmul %257, %259, %cst_93 {dimension_numbers = #tpu.dot_dimension_numbers<[1], [0], [0], [1], [0, 0, 1, 1], [], []>} : vector<8x32xbf16>, vector<32x32xbf16>, vector<8x32xf32> -> vector<8x32xf32>
    %c1_94 = arith.constant 1 : index
    %c0_95 = arith.constant 0 : index
    %c0_96 = arith.constant 0 : index
    %261 = vector.load %arg6[%c1_94, %c0_95, %c0_96] : memref<2x1x32xf32, #tpu.memory_space<vmem>>, vector<1x1x32xf32>
    %262 = vector.shape_cast %261 : vector<1x1x32xf32> to vector<1x32xf32>
    %263 = vector.broadcast %262 : vector<1x32xf32> to vector<8x32xf32>
    %264 = arith.addf %260, %263 : vector<8x32xf32>
    %265 = arith.addf %196, %264 : vector<8x32xf32>
    %c1_97 = arith.constant 1 : index
    %c0_98 = arith.constant 0 : index
    %c0_99 = arith.constant 0 : index
    %266 = vector.load %arg7[%c1_97, %c0_98, %c0_99] : memref<2x1x32xf32, #tpu.memory_space<vmem>>, vector<1x1x32xf32>
    %267 = vector.shape_cast %266 : vector<1x1x32xf32> to vector<1x32xf32>
    %c1_100 = arith.constant 1 : index
    %c0_101 = arith.constant 0 : index
    %c0_102 = arith.constant 0 : index
    %268 = vector.load %arg8[%c1_100, %c0_101, %c0_102] : memref<2x1x32xf32, #tpu.memory_space<vmem>>, vector<1x1x32xf32>
    %269 = vector.shape_cast %268 : vector<1x1x32xf32> to vector<1x32xf32>
    %cst_103 = arith.constant dense<0.000000e+00> : vector<8xf32>
    %270 = vector.multi_reduction <add>, %265, %cst_103 [1] : vector<8x32xf32> to vector<8xf32>
    %271 = vector.shape_cast %270 : vector<8xf32> to vector<8x1xf32>
    %cst_104 = arith.constant 3.200000e+01 : f32
    %272 = vector.broadcast %cst_104 : f32 to vector<8x1xf32>
    %273 = arith.divf %271, %272 : vector<8x1xf32>
    %274 = vector.broadcast %273 : vector<8x1xf32> to vector<8x32xf32>
    %275 = arith.subf %265, %274 : vector<8x32xf32>
    %276 = arith.mulf %275, %275 : vector<8x32xf32>
    %cst_105 = arith.constant dense<0.000000e+00> : vector<8xf32>
    %277 = vector.multi_reduction <add>, %276, %cst_105 [1] : vector<8x32xf32> to vector<8xf32>
    %278 = vector.shape_cast %277 : vector<8xf32> to vector<8x1xf32>
    %cst_106 = arith.constant 3.200000e+01 : f32
    %279 = vector.broadcast %cst_106 : f32 to vector<8x1xf32>
    %280 = arith.divf %278, %279 : vector<8x1xf32>
    %281 = vector.broadcast %273 : vector<8x1xf32> to vector<8x32xf32>
    %282 = arith.subf %265, %281 : vector<8x32xf32>
    %cst_107 = arith.constant 9.99999974E-6 : f32
    %283 = vector.broadcast %cst_107 : f32 to vector<8x1xf32>
    %284 = arith.addf %280, %283 : vector<8x1xf32>
    %285 = math.rsqrt %284 : vector<8x1xf32>
    %286 = vector.broadcast %285 : vector<8x1xf32> to vector<8x32xf32>
    %287 = arith.mulf %282, %286 : vector<8x32xf32>
    %288 = vector.broadcast %267 : vector<1x32xf32> to vector<8x32xf32>
    %289 = arith.mulf %287, %288 : vector<8x32xf32>
    %290 = vector.broadcast %269 : vector<1x32xf32> to vector<8x32xf32>
    %291 = arith.addf %289, %290 : vector<8x32xf32>
    %292 = arith.truncf %291 : vector<8x32xf32> to vector<8x32xbf16>
    %c1_108 = arith.constant 1 : index
    %c0_109 = arith.constant 0 : index
    %c0_110 = arith.constant 0 : index
    %293 = vector.load %arg9[%c1_108, %c0_109, %c0_110] : memref<2x32x64xbf16, #tpu.memory_space<vmem>>, vector<1x32x64xbf16>
    %294 = vector.shape_cast %293 : vector<1x32x64xbf16> to vector<32x64xbf16>
    %cst_111 = arith.constant dense<0.000000e+00> : vector<8x64xf32>
    %295 = tpu.matmul %292, %294, %cst_111 {dimension_numbers = #tpu.dot_dimension_numbers<[1], [0], [0], [1], [0, 0, 1, 1], [], []>} : vector<8x32xbf16>, vector<32x64xbf16>, vector<8x64xf32> -> vector<8x64xf32>
    %c1_112 = arith.constant 1 : index
    %c0_113 = arith.constant 0 : index
    %c0_114 = arith.constant 0 : index
    %296 = vector.load %arg10[%c1_112, %c0_113, %c0_114] : memref<2x1x64xf32, #tpu.memory_space<vmem>>, vector<1x1x64xf32>
    %297 = vector.shape_cast %296 : vector<1x1x64xf32> to vector<1x64xf32>
    %298 = vector.broadcast %297 : vector<1x64xf32> to vector<8x64xf32>
    %299 = arith.addf %295, %298 : vector<8x64xf32>
    %cst_115 = arith.constant 0.000000e+00 : f32
    %300 = vector.broadcast %cst_115 : f32 to vector<8x64xf32>
    %301 = arith.maximumf %299, %300 : vector<8x64xf32>
    %302 = arith.truncf %301 : vector<8x64xf32> to vector<8x64xbf16>
    %c1_116 = arith.constant 1 : index
    %c0_117 = arith.constant 0 : index
    %c0_118 = arith.constant 0 : index
    %303 = vector.load %arg11[%c1_116, %c0_117, %c0_118] : memref<2x64x32xbf16, #tpu.memory_space<vmem>>, vector<1x64x32xbf16>
    %304 = vector.shape_cast %303 : vector<1x64x32xbf16> to vector<64x32xbf16>
    %cst_119 = arith.constant dense<0.000000e+00> : vector<8x32xf32>
    %305 = tpu.matmul %302, %304, %cst_119 {dimension_numbers = #tpu.dot_dimension_numbers<[1], [0], [0], [1], [0, 0, 1, 1], [], []>} : vector<8x64xbf16>, vector<64x32xbf16>, vector<8x32xf32> -> vector<8x32xf32>
    %c1_120 = arith.constant 1 : index
    %c0_121 = arith.constant 0 : index
    %c0_122 = arith.constant 0 : index
    %306 = vector.load %arg12[%c1_120, %c0_121, %c0_122] : memref<2x1x32xf32, #tpu.memory_space<vmem>>, vector<1x1x32xf32>
    %307 = vector.shape_cast %306 : vector<1x1x32xf32> to vector<1x32xf32>
    %308 = vector.broadcast %307 : vector<1x32xf32> to vector<8x32xf32>
    %309 = arith.addf %305, %308 : vector<8x32xf32>
    %310 = arith.addf %291, %309 : vector<8x32xf32>
    %c1_123 = arith.constant 1 : index
    %c0_124 = arith.constant 0 : index
    %c0_125 = arith.constant 0 : index
    %311 = vector.load %arg13[%c1_123, %c0_124, %c0_125] : memref<2x1x32xf32, #tpu.memory_space<vmem>>, vector<1x1x32xf32>
    %312 = vector.shape_cast %311 : vector<1x1x32xf32> to vector<1x32xf32>
    %c1_126 = arith.constant 1 : index
    %c0_127 = arith.constant 0 : index
    %c0_128 = arith.constant 0 : index
    %313 = vector.load %arg14[%c1_126, %c0_127, %c0_128] : memref<2x1x32xf32, #tpu.memory_space<vmem>>, vector<1x1x32xf32>
    %314 = vector.shape_cast %313 : vector<1x1x32xf32> to vector<1x32xf32>
    %cst_129 = arith.constant dense<0.000000e+00> : vector<8xf32>
    %315 = vector.multi_reduction <add>, %310, %cst_129 [1] : vector<8x32xf32> to vector<8xf32>
    %316 = vector.shape_cast %315 : vector<8xf32> to vector<8x1xf32>
    %cst_130 = arith.constant 3.200000e+01 : f32
    %317 = vector.broadcast %cst_130 : f32 to vector<8x1xf32>
    %318 = arith.divf %316, %317 : vector<8x1xf32>
    %319 = vector.broadcast %318 : vector<8x1xf32> to vector<8x32xf32>
    %320 = arith.subf %310, %319 : vector<8x32xf32>
    %321 = arith.mulf %320, %320 : vector<8x32xf32>
    %cst_131 = arith.constant dense<0.000000e+00> : vector<8xf32>
    %322 = vector.multi_reduction <add>, %321, %cst_131 [1] : vector<8x32xf32> to vector<8xf32>
    %323 = vector.shape_cast %322 : vector<8xf32> to vector<8x1xf32>
    %cst_132 = arith.constant 3.200000e+01 : f32
    %324 = vector.broadcast %cst_132 : f32 to vector<8x1xf32>
    %325 = arith.divf %323, %324 : vector<8x1xf32>
    %326 = vector.broadcast %318 : vector<8x1xf32> to vector<8x32xf32>
    %327 = arith.subf %310, %326 : vector<8x32xf32>
    %cst_133 = arith.constant 9.99999974E-6 : f32
    %328 = vector.broadcast %cst_133 : f32 to vector<8x1xf32>
    %329 = arith.addf %325, %328 : vector<8x1xf32>
    %330 = math.rsqrt %329 : vector<8x1xf32>
    %331 = vector.broadcast %330 : vector<8x1xf32> to vector<8x32xf32>
    %332 = arith.mulf %327, %331 : vector<8x32xf32>
    %333 = vector.broadcast %312 : vector<1x32xf32> to vector<8x32xf32>
    %334 = arith.mulf %332, %333 : vector<8x32xf32>
    %335 = vector.broadcast %314 : vector<1x32xf32> to vector<8x32xf32>
    %336 = arith.addf %334, %335 : vector<8x32xf32>
    %337 = arith.truncf %336 : vector<8x32xf32> to vector<8x32xbf16>
    %c0_134 = arith.constant 0 : index
    %c0_135 = arith.constant 0 : index
    %338 = vector.load %arg15[%c0_134, %c0_135] : memref<32x128xbf16, #tpu.memory_space<vmem>>, vector<32x128xbf16>
    %cst_136 = arith.constant dense<0.000000e+00> : vector<8x128xf32>
    %339 = tpu.matmul %337, %338, %cst_136 {dimension_numbers = #tpu.dot_dimension_numbers<[1], [0], [0], [1], [0, 0, 1, 1], [], []>} : vector<8x32xbf16>, vector<32x128xbf16>, vector<8x128xf32> -> vector<8x128xf32>
    %c0_137 = arith.constant 0 : index
    %c0_138 = arith.constant 0 : index
    %340 = vector.load %arg16[%c0_137, %c0_138] : memref<1x128xf32, #tpu.memory_space<vmem>>, vector<1x128xf32>
    %341 = vector.broadcast %340 : vector<1x128xf32> to vector<8x128xf32>
    %342 = arith.addf %339, %341 : vector<8x128xf32>
    %c0_139 = arith.constant 0 : index
    %c0_140 = arith.constant 0 : index
    %343 = vector.load %arg17[%c0_139, %c0_140] : memref<8x128xf32, #tpu.memory_space<vmem>>, vector<8x128xf32>
    tpu.vector_store %arg17[%c0_139, %c0_140], %342 {strides = array<i32>} : memref<8x128xf32, #tpu.memory_space<vmem>>, vector<8x128xf32>,
    return
  }
  func.func @transform_0(%arg0: i32) -> i32 {
    %c0_i32 = arith.constant 0 : i32
    %c0_i32_0 = arith.constant 0 : i32
    return %c0_i32 : i32
  }
  func.func @transform_1(%arg0: i32) -> (i32, i32) {
    %c0_i32 = arith.constant 0 : i32
    %c0_i32_0 = arith.constant 0 : i32
    %c0_i32_1 = arith.constant 0 : i32
    return %c0_i32, %c0_i32_0 : i32, i32
  }
  func.func @transform_2(%arg0: i32) -> (i32, i32, i32) {
    %c0_i32 = arith.constant 0 : i32
    %c0_i32_0 = arith.constant 0 : i32
    %c0_i32_1 = arith.constant 0 : i32
    %c0_i32_2 = arith.constant 0 : i32
    return %c0_i32, %c0_i32_0, %c0_i32_1 : i32, i32, i32
  }
  func.func @transform_3(%arg0: i32) -> (i32, i32, i32) {
    %c0_i32 = arith.constant 0 : i32
    %c0_i32_0 = arith.constant 0 : i32
    %c0_i32_1 = arith.constant 0 : i32
    %c0_i32_2 = arith.constant 0 : i32
    return %c0_i32, %c0_i32_0, %c0_i32_1 : i32, i32, i32
  }
  func.func @transform_4(%arg0: i32) -> (i32, i32, i32) {
    %c0_i32 = arith.constant 0 : i32
    %c0_i32_0 = arith.constant 0 : i32
    %c0_i32_1 = arith.constant 0 : i32
    %c0_i32_2 = arith.constant 0 : i32
    return %c0_i32, %c0_i32_0, %c0_i32_1 : i32, i32, i32
  }
  func.func @transform_5(%arg0: i32) -> (i32, i32, i32) {
    %c0_i32 = arith.constant 0 : i32
    %c0_i32_0 = arith.constant 0 : i32
    %c0_i32_1 = arith.constant 0 : i32
    %c0_i32_2 = arith.constant 0 : i32
    return %c0_i32, %c0_i32_0, %c0_i32_1 : i32, i32, i32
  }
  func.func @transform_6(%arg0: i32) -> (i32, i32, i32) {
    %c0_i32 = arith.constant 0 : i32
    %c0_i32_0 = arith.constant 0 : i32
    %c0_i32_1 = arith.constant 0 : i32
    %c0_i32_2 = arith.constant 0 : i32
    return %c0_i32, %c0_i32_0, %c0_i32_1 : i32, i32, i32
  }
  func.func @transform_7(%arg0: i32) -> (i32, i32, i32) {
    %c0_i32 = arith.constant 0 : i32
    %c0_i32_0 = arith.constant 0 : i32
    %c0_i32_1 = arith.constant 0 : i32
    %c0_i32_2 = arith.constant 0 : i32
    return %c0_i32, %c0_i32_0, %c0_i32_1 : i32, i32, i32
  }
  func.func @transform_8(%arg0: i32) -> (i32, i32, i32) {
    %c0_i32 = arith.constant 0 : i32
    %c0_i32_0 = arith.constant 0 : i32
    %c0_i32_1 = arith.constant 0 : i32
    %c0_i32_2 = arith.constant 0 : i32
    return %c0_i32, %c0_i32_0, %c0_i32_1 : i32, i32, i32
  }
  func.func @transform_9(%arg0: i32) -> (i32, i32, i32) {
    %c0_i32 = arith.constant 0 : i32
    %c0_i32_0 = arith.constant 0 : i32
    %c0_i32_1 = arith.constant 0 : i32
    %c0_i32_2 = arith.constant 0 : i32
    return %c0_i32, %c0_i32_0, %c0_i32_1 : i32, i32, i32
  }
  func.func @transform_10(%arg0: i32) -> (i32, i32, i32) {
    %c0_i32 = arith.constant 0 : i32
    %c0_i32_0 = arith.constant 0 : i32
    %c0_i32_1 = arith.constant 0 : i32
    %c0_i32_2 = arith.constant 0 : i32
    return %c0_i32, %c0_i32_0, %c0_i32_1 : i32, i32, i32
  }
  func.func @transform_11(%arg0: i32) -> (i32, i32, i32) {
    %c0_i32 = arith.constant 0 : i32
    %c0_i32_0 = arith.constant 0 : i32
    %c0_i32_1 = arith.constant 0 : i32
    %c0_i32_2 = arith.constant 0 : i32
    return %c0_i32, %c0_i32_0, %c0_i32_1 : i32, i32, i32
  }
  func.func @transform_12(%arg0: i32) -> (i32, i32, i32) {
    %c0_i32 = arith.constant 0 : i32
    %c0_i32_0 = arith.constant 0 : i32
    %c0_i32_1 = arith.constant 0 : i32
    %c0_i32_2 = arith.constant 0 : i32
    return %c0_i32, %c0_i32_0, %c0_i32_1 : i32, i32, i32
  }
  func.func @transform_13(%arg0: i32) -> (i32, i32, i32) {
    %c0_i32 = arith.constant 0 : i32
    %c0_i32_0 = arith.constant 0 : i32
    %c0_i32_1 = arith.constant 0 : i32
    %c0_i32_2 = arith.constant 0 : i32
    return %c0_i32, %c0_i32_0, %c0_i32_1 : i32, i32, i32
  }
  func.func @transform_14(%arg0: i32) -> (i32, i32) {
    %c0_i32 = arith.constant 0 : i32
    %c0_i32_0 = arith.constant 0 : i32
    %c0_i32_1 = arith.constant 0 : i32
    return %c0_i32, %c0_i32_0 : i32, i32
  }
  func.func @transform_15(%arg0: i32) -> (i32, i32) {
    %c0_i32 = arith.constant 0 : i32
    %c0_i32_0 = arith.constant 0 : i32
    %c0_i32_1 = arith.constant 0 : i32
    return %c0_i32, %c0_i32_0 : i32, i32
  }
  func.func @transform_16(%arg0: i32) -> (i32, i32) {
    %c0_i32 = arith.constant 0 : i32
    %c0_i32_0 = arith.constant 0 : i32
    return %arg0, %c0_i32 : i32, i32
  }
}

</mosaic_0001>

<bundles_post_ra>
// kernel: tpu_custom_call.1
= control target key start
LH: loop header
LB: loop body
LE: loop exit
PB: predicated region body
PF: predicated region fallthrough
CT: control target
= control target key end

     0   :  { %s2515_s0 = inlined_call_operand.vmem [shape: s32[16], index: 0, kind: input, shape index: {}]   ;;  %s2516_s1 = inlined_call_operand.vmem [shape: f32[64,32], index: 1, kind: input, shape index: {}]   ;;  %s2517_s2 = inlined_call_operand.vmem [shape: bf16[2,32,96], index: 2, kind: input, shape index: {}]   ;;  %s2518_s3 = inlined_call_operand.vmem [shape: f32[2,1,96], index: 3, kind: input, shape index: {}]   ;;  %s2519_s4 = inlined_call_operand.vmem [shape: bf16[2,32,32], index: 4, kind: input, shape index: {}]   ;;  %s2520_s5 = inlined_call_operand.vmem [shape: f32[2,1,32], index: 5, kind: input, shape index: {}]   ;;  %s2521_s6 = inlined_call_operand.vmem [shape: f32[2,1,32], index: 6, kind: input, shape index: {}]   ;;  %s2522_s7 = inlined_call_operand.vmem [shape: f32[2,1,32], index: 7, kind: input, shape index: {}]   ;;  %s2523_s8 = inlined_call_operand.vmem [shape: bf16[2,32,64], index: 8, kind: input, shape index: {}]   ;;  %s2524_s9 = inlined_call_operand.vmem [shape: f32[2,1,64], index: 9, kind: input, shape index: {}]   ;;  %s2525_s10 = inlined_call_operand.vmem [shape: bf16[2,64,32], index: 10, kind: input, shape index: {}]   ;;  %s2526_s11 = inlined_call_operand.vmem [shape: f32[2,1,32], index: 11, kind: input, shape index: {}]   ;;  %s2527_s12 = inlined_call_operand.vmem [shape: f32[2,1,32], index: 12, kind: input, shape index: {}]   ;;  %s2528_s13 = inlined_call_operand.vmem [shape: f32[2,1,32], index: 13, kind: input, shape index: {}]   ;;  %s2529_s14 = inlined_call_operand.vmem [shape: bf16[32,128], index: 14, kind: input, shape index: {}]   ;;  %s2530_s15 = inlined_call_operand.vmem [shape: f32[1,128], index: 15, kind: input, shape index: {}]   ;;  %s2531_s16 = inlined_call_operand.hbm [shape: f32[16,128], index: 16, kind: output, shape index: {}]  }
   0x1   :  { %2545 = sst [smem:[#allocation17_spill]] %s2515_s0 }
   0x2   :  { %2546 = sst [smem:[#allocation18_spill]] %s2516_s1 }
   0x3   :  { %2547 = sst [smem:[#allocation19_spill]] %s2527_s12 }
   0x4   :  { %2548 = sst [smem:[#allocation20_spill]] %s2528_s13 }
   0x5   :  { %2549 = sst [smem:[#allocation21_spill]] %s2529_s14 }
   0x6   :  { %2550 = sst [smem:[#allocation22_spill]] %s2530_s15 }
   0x7   :  { %2551 = sst [smem:[#allocation23_spill]] %s2531_s16 }
   0x8   :  { %21 = vsyncpa [#allocation5], 0 }
   0x9   :  { %22 = vsyncpa [#allocation4], 0 }
   0xa   :  { %24 = vsyncpa [#allocation4 + $0x1], 0  ;;  %s2149_s21 = smov 0   ;;  %s2151_s22 = smov 0  }
   0xb   :  { %s2153_s23 = smov 0   ;;  %s2155_s24 = smov 0  }
   0xc LB: > { %2552 = sst [smem:[#allocation9_spill]] %s2040_s21  ;;  %s1678_s25 = sadd.s32 4294967295, %s2052_s24   ;;  %s2052_s24 = sphi %s2155_s24, %s2577_s24   ;;  %s2048_s23 = sphi %s2153_s23, %s2580_s23   ;;  %s2044_s22 = sphi %s2151_s22, %s2579_s22   ;;  %s2040_s21 = sphi %s2149_s21, %s2578_s21  }
   0xd   : > { %2553 = sst [smem:[#allocation10_spill]] %s2044_s22  ;;  %s1679_s26 = sadd.s32 4294967294, %s2052_s24  }
   0xe   : > { %2554 = sst [smem:[#allocation11_spill]] %s2048_s23  ;;  %s2172_s27 = sadd.s32 1, %s2052_s24  }
   0xf   : > { %2555 = sst [smem:[#allocation12_spill]] %s2052_s24  ;;  %s373_s28 = sadd.s32 1, %s2048_s23 }
  0x10   : > { %2556 = sst [smem:[#allocation13_spill]] %s2172_s27  ;;  %s370_s29 = ssub.s32 %s2052_s24, %s2172_s27 }
  0x11   : > { %p383_p0 = scmp.ne.s32.totalorder %s2048_s23, %s2044_s22  ;;  %p371_p1 = scmp.eq.s32.totalorder %s370_s29, 0 }
  0x12   : > { %p384_p2 = scmp.eq.s32.totalorder %s1678_s25, 1  ;;  %p389_p3 = scmp.ne.s32.totalorder %s2044_s22, %s2040_s21 }
  0x13   : > { %p390_p4 = scmp.eq.s32.totalorder %s1679_s26, 1  ;;  %p1680_p7 = scmp.ge.s32.totalorder %s2052_s24, 1 }
  0x14   : > { %s2182_s30 = scalar_select %p371_p1, %s2048_s23, %s373_s28  }
  0x15   : > { %p2184_p5 = por %p384_p2, %p383_p0  ;;  %p2188_p6 = por %p390_p4, %p389_p3 }
  0x16   : > { %2557 = sst [smem:[#allocation14_spill]] %s2182_s30  ;;  %p397_p8 = scmp.lt.s32.totalorder %s2052_s24, 3 }
  0x17   : > { %s2558_s0 = scalar_select %p2184_p5, 1, 0 }
  0x18   : > { %s2560_s17 = scalar_select %p2188_p6, 1, 0 }
  0x19   : > { %2559 = sst [smem:[#allocation15_spill]] %s2558_s0  ;;  %p1867_p9 = scmp.eq.s32.totalorder %s1678_s25, 0 }
  0x1a   : > { %2561 = sst [smem:[#allocation16_spill]] %s2560_s17  ;;  %p398_p10 = pnand %p1680_p7, %p397_p8 }
  0x1b   : > { %s2562_s20 = sld [smem:[#allocation17_spill]]  ;;  %s2054_s26 = smov [#allocation3]  }
  0x1c   : > { %p1859_p11 = pneg %p398_p10 }
  0x1e   : > { %p1860_p12 = pnand %p1867_p9, %p1859_p11  ;;  %467 = sbr.rel (%p398_p10) target bundleno = 4118 (0x1016), region = 84 }
  0x21   : > { %s409_s29 = sshll.u32 %s2562_s20, 4  ;;  %s410_s29 = int_to_ptr.vmem [resolvable:$true] %s409_s29 }
  0x22   : > { %1862 = dma.vmem_to_smem (!%p1860_p12), %s410_s29, 16, %s2054_s26, [#allocation5]  }
  0x23   : > { %2031 = dma.done.wait (%p1867_p9), [#allocation5], 16  }
  0x24   : > { %2033 = vsyncadd (%p1867_p9), [#allocation5], 4294967280 }
  0x25   : > { %474 = sfence }
  0x26   : > { %v1832_v0 = vld [vmem:[%s2517_s2 + $0x8] sm:$0xff]  ;;  %s2200_s23 = sshll.u32 %s1678_s25, 3  ;;  %v1831_v1 = vld [vmem:[%s2517_s2] sm:$0xff]  ;;  %vm519_vm0 = vcmask 253952   ;;  %s2563_s1 = sld [smem:[#allocation18_spill]]  ;;  %vm578_vm1 = vcmask 261120  }
  0x27   : > { %s516_s18 = sld [smem:[#allocation3 + %s2200_s23]]  ;;  %s521_s19 = sadd.s32 1, %s2200_s23  ;;  %588 = vmatpush.bf16.msra.mxu0 %v1832_v0  ;;  %v1912_v12 = vld [vmem:[%s2518_s3] ss:$0 sm:$0xff]  ;;  %vm614_vm2 = vcmask 64512   ;;  %vm759_vm3 = vcmask 1043456  }
  0x28   : > { %s522_s30 = sld [smem:[#allocation3 + %s521_s19]]  ;;  %s526_s20 = sadd.s32 2, %s2200_s23  ;;  %vm852_vm4 = vcmask 130048   ;;  %vm854_vm5 = vcmask 195584   ;;  %vm1008_vm10 = vcmask 523264  }
  0x29   : > { %s527_s25 = sld [smem:[#allocation3 + %s526_s20]]  ;;  %s531_s29 = sadd.s32 3, %s2200_s23 }
  0x2a   : > { %s532_s26 = sld [smem:[#allocation3 + %s531_s29]]  ;;  %s536_s28 = sadd.s32 4, %s2200_s23 }
  0x2b   : > { %s537_s27 = sld [smem:[#allocation3 + %s536_s28]]  ;;  %s541_s17 = sadd.s32 5, %s2200_s23  ;;  %589 = vmatpush.bf16.msra.mxu0 %v1831_v1 }
  0x2c   : > { %s542_s21 = sld [smem:[#allocation3 + %s541_s17]]  ;;  %s546_s24 = sadd.s32 6, %s2200_s23 }
  0x2d   : > { %s517_s16 = scalar_lea.vmem %s2563_s1, %s516_s18  ;;  %s547_s22 = sld [smem:[#allocation3 + %s546_s24]] }
  0x2e   : > { %v518_v2 = vld [vmem:[%s517_s16] sm:$0x1]  ;;  %s523_s19 = scalar_lea.vmem %s2563_s1, %s522_s30  ;;  %s551_s12 = sadd.s32 7, %s2200_s23 }
  0x2f   : > { %520 = vst.msk [vmem:[#allocation2] sm:$0x1] %vm519_vm0, %v518_v2  ;;  %v524_v3 = vld [vmem:[%s523_s19] sm:$0x1]  ;;  %s528_s28 = scalar_lea.vmem %s2563_s1, %s527_s25  ;;  %s552_s17 = sld [smem:[#allocation3 + %s551_s12]] }
  0x30   : > { %525 = vst.msk [vmem:[#allocation2 + $0x1] sm:$0x1] %vm519_vm0, %v524_v3  ;;  %v529_v4 = vld [vmem:[%s528_s28] sm:$0x1]  ;;  %s533_s16 = scalar_lea.vmem %s2563_s1, %s532_s26  ;;  %s2055_s28 = smov 104  }
  0x31   : > { %530 = vst.msk [vmem:[#allocation2 + $0x2] sm:$0x1] %vm519_vm0, %v529_v4  ;;  %v534_v5 = vld [vmem:[%s533_s16] sm:$0x1]  ;;  %s538_s24 = scalar_lea.vmem %s2563_s1, %s537_s27  ;;  %s2057_s15 = smov 112  }
  0x32   : > { %535 = vst.msk [vmem:[#allocation2 + $0x3] sm:$0x1] %vm519_vm0, %v534_v5  ;;  %v539_v6 = vld [vmem:[%s538_s24] sm:$0x1]  ;;  %s543_s12 = scalar_lea.vmem %s2563_s1, %s542_s21  ;;  %s2058_s0 = smov 96  }
  0x33   : > { %540 = vst.msk [vmem:[#allocation2 + $0x4] sm:$0x1] %vm519_vm0, %v539_v6  ;;  %v544_v7 = vld [vmem:[%s543_s12] sm:$0x1]  ;;  %s548_s26 = scalar_lea.vmem %s2563_s1, %s547_s22  ;;  %s2059_s16 = smov 64  }
  0x34   : > { %545 = vst.msk [vmem:[#allocation2 + $0x5] sm:$0x1] %vm519_vm0, %v544_v7  ;;  %v549_v8 = vld [vmem:[%s548_s26] sm:$0x1]  ;;  %s2060_s13 = smov 16   ;;  %s2061_s14 = smov 8  }
  0x35   : > { %550 = vst.msk [vmem:[#allocation2 + $0x6] sm:$0x1] %vm519_vm0, %v549_v8  ;;  %s553_s29 = scalar_lea.vmem %s2563_s1, %s552_s17  ;;  %s2056_s17 = smov 120  }
  0x36   : > { %v554_v9 = vld [vmem:[%s553_s29] sm:$0x1]  ;;  %s2062_s24 = smov 24   ;;  %s2564_s22 = sld [smem:[#allocation19_spill]] }
  0x37   : > { %555 = vst.msk [vmem:[#allocation2 + $0x7] sm:$0x1] %vm519_vm0, %v554_v9  ;;  %s2566_s25 = sld [smem:[#allocation20_spill]] }
  0x38   : > { %s2567_s21 = sld [smem:[#allocation21_spill]] }
  0x39   : > { %s2569_s19 = sld [smem:[#allocation10_spill]] }
  0x3a   : > { %s2573_s12 = sld [smem:[#allocation22_spill]] }
  0x3c   : > { %s2565_s18 = smov %s2564_s22 }
  0x3e   : > { %v2245_v10 = vld [vmem:[#allocation2] sm:$0xff]  ;;  %s2568_s30 = smov %s2567_s21 }
  0x3f   : > { %v557_v11 = vpack.c.bf16 %v2245_v10, %v2245_v10 }
  0x41   : > { %1694 = vmatmul.msk.bf16.vlgmr.msra.gmra.mxu0 %vm578_vm1, %v557_v11 }
  0xbe   : > { %v591_v13 = vpop.f32.mrf.mxu0 }
  0xbf   : > { %v592_v14 = vadd.f32 %v1912_v12, %v591_v13 }
  0xc1   : > { %602 = vrot.lane.b32.xlu1 %v592_v14, %s2055_s28  ;;  %596 = vrot.lane.b32.xlu0 %v592_v14, %s2056_s17  ;;  %v605_v16 = vpack.c.bf16 %v592_v14, %v592_v14 }
  0xc3   : > { %v610_v17 = vunpack.c.l.b16 %v605_v16 }
  0xc5   : > { %v2256_v18 = vpack.c.b16 %v610_v17, %v610_v17 }
  0xc6   : > { %v593_v15 = vpop.f32.mrf.mxu0 }
  0xc9   : > { %599 = vrot.lane.b32.xlu0 %v592_v14, %s2057_s15 }
  0xd1   : > { %612 = vrot.lane.b32.xlu0 %v2256_v18, %s2058_s0 }
 0x133   : > { %v597_v19 = vpop.permute.xlu0 %596  ;;  %v603_v25 = vpop.permute.xlu1 %602 }
 0x134   : > { %v606_v20 = vpack.c.bf16 %v597_v19, %v597_v19  ;;  %v608_v27 = vpack.c.bf16 %v603_v25, %v603_v25 }
 0x136   : > { %v635_v21 = vunpack.c.l.b16 %v606_v20  ;;  %v683_v30 = vunpack.c.l.b16 %v608_v27 }
 0x138   : > { %v2260_v22 = vpack.c.b16 %v635_v21, %v635_v21  ;;  %v684_v32 = vpack.c.b16 %v683_v30, %v683_v30 }
 0x13a   : > { %637 = vrot.lane.b32.xlu1 %v2260_v22, %s2058_s0 }
 0x13b   : > { %v600_v23 = vpop.permute.xlu0 %599 }
 0x13c   : > { %v607_v24 = vpack.c.bf16 %v600_v23, %v600_v23 }
 0x13e   : > { %v659_v26 = vunpack.c.l.b16 %v607_v24 }
 0x140   : > { %v660_v28 = vpack.c.b16 %v659_v26, %v659_v26 }
 0x142   : > { %661 = vrot.lane.b32.xlu2 %v660_v28, %s2058_s0 }
 0x143   : > { %v613_v29 = vpop.permute.xlu0 %612 }
 0x144   : > { %v619_v31 = vsel %vm614_vm2, %v613_v29, 0 }
 0x145   : > { %628 = vmatpush.bf16.xpose.msra.mxu1 %v619_v31 }
 0x14a   : > { %685 = vrot.lane.b32.xlu2 %v684_v32, %s2058_s0 }
 0x14c   : > { %1695 = vmatmul.msk.bf16.vlgmr.msra.gmra.mxu1 %vm614_vm2, %v605_v16 }
 0x19c   : > { %v662_v33 = vpop.permute.xlu2 %661 }
 0x19d   : > { %v667_v34 = vsel %vm614_vm2, %v662_v33, 0 }
 0x19e   : > { %676 = vmatpush.bf16.xpose.msra.mxu3 %v667_v34 }
 0x1a4   : > { %v686_v35 = vpop.permute.xlu2 %685 }
 0x1a5   : > { %1697 = vmatmul.msk.bf16.vlgmr.msra.gmra.mxu3 %vm614_vm2, %v607_v24  ;;  %v691_v36 = vsel %vm614_vm2, %v686_v35, 0 }
 0x1a6   : > { %700 = vmatpush.bf16.xpose.msrb.mxu0 %v691_v36 }
 0x1ac   : > { %v638_v37 = vpop.permute.xlu1 %637 }
 0x1ad   : > { %1698 = vmatmul.msk.bf16.vlgmr.msrb.gmra.mxu0 %vm614_vm2, %v608_v27  ;;  %v643_v38 = vsel %vm614_vm2, %v638_v37, 0 }
 0x1ae   : > { %652 = vmatpush.bf16.xpose.msra.mxu2 %v643_v38 }
 0x1b5   : > { %1696 = vmatmul.msk.bf16.vlgmr.msra.gmra.mxu2 %vm614_vm2, %v606_v20 }
 0x1c9   : > { %v630_v39 = vpop.f32.mrf.mxu1 }
 0x1ca   : > { %v706_v46 = vsel %vm614_vm2, %v630_v39, -inf }
 0x1d1   : > { %v632_v40 = vpop.f32.mrf.mxu1 }
 0x1d2   : > { %v1834_v40 = vld [vmem:[%s2519_s4 + $0x8] sm:$0xff] }
 0x228   : > { %v678_v41 = vpop.f32.mrf.mxu3 }
 0x229   : > { %v712_v42 = vsel %vm614_vm2, %v678_v41, -inf }
 0x22a   : > { %713 = vmax.xlane.f32.xlu2 %v712_v42  ;;  %v702_v43 = vpop.f32.mrf.mxu0 }
 0x22b   : > { %v715_v44 = vsel %vm614_vm2, %v702_v43, -inf }
 0x22c   : > { %716 = vmax.xlane.f32.xlu0 %v715_v44 }
 0x230   : > { %v680_v45 = vpop.f32.mrf.mxu3 }
 0x232   : > { %v704_v47 = vpop.f32.mrf.mxu0  ;;  %707 = vmax.xlane.f32.xlu2 %v706_v46 }
 0x238   : > { %v654_v48 = vpop.f32.mrf.mxu2 }
 0x239   : > { %v709_v49 = vsel %vm614_vm2, %v654_v48, -inf }
 0x23a   : > { %710 = vmax.xlane.f32.xlu1 %v709_v49  ;;  %v1913_v49 = vld [vmem:[%s2520_s5] ss:$0 sm:$0xff] }
 0x240   : > { %v656_v50 = vpop.f32.mrf.mxu2 }
 0x29d   : > { %v714_v51 = vpop.xlane.xlu2 %713 }
 0x29e   : > { %v720_v52 = vsub.f32 %v678_v41, %v714_v51  ;;  %v1833_v41 = vld [vmem:[%s2519_s4] sm:$0xff] }
 0x29f   : > { %v717_v53 = vpop.xlane.xlu0 %716 }
 0x2a0   : > { %v726_v54 = vmul.f32 1.442695, %v720_v52  ;;  %v721_v55 = vsub.f32 %v702_v43, %v717_v53 }
 0x2a2   : > { %1929 = vpow2.f32 %v726_v54  ;;  %v728_v56 = vmul.f32 1.442695, %v721_v55  ;;  %v2063_v55 = vmov 32.0  }
 0x2a4   : > { %1931 = vpow2.f32 %v728_v56 }
 0x2a5   : > { %v708_v2 = vpop.xlane.xlu2 %707 }
 0x2a6   : > { %v718_v3 = vsub.f32 %v630_v39, %v708_v2  ;;  %v1836_v2 = vld [vmem:[%s2523_s8 + $0x8] sm:$0xff] }
 0x2a8   : > { %v1930_v57 = vpop.eup %1929  ;;  %v722_v4 = vmul.f32 1.442695, %v718_v3  ;;  %v1835_v3 = vld [vmem:[%s2523_s8] sm:$0xff] }
 0x2a9   : > { %v736_v58 = vsel %vm614_vm2, %v1930_v57, 0.0 }
 0x2aa   : > { %v1932_v59 = vpop.eup %1931  ;;  %737 = vadd.xlane.f32.xlu2 %v736_v58 }
 0x2ab   : > { %v739_v60 = vsel %vm614_vm2, %v1932_v59, 0.0 }
 0x2ac   : > { %740 = vadd.xlane.f32.xlu0 %v739_v60 }
 0x2ad   : > { %v711_v61 = vpop.xlane.xlu1 %710 }
 0x2ae   : > { %v719_v62 = vsub.f32 %v654_v48, %v711_v61 }
 0x2b0   : > { %v724_v63 = vmul.f32 1.442695, %v719_v62 }
 0x2b2   : > { %1933 = vpow2.f32 %v724_v63 }
 0x2b3   : > { %1935 = vpow2.f32 %v722_v4  ;;  %v1840_v4 = vld [vmem:[%s2525_s10 + $0x18] sm:$0xff] }
 0x2b8   : > { %v1934_v0 = vpop.eup %1933 }
 0x2b9   : > { %v733_v1 = vsel %vm614_vm2, %v1934_v0, 0.0  ;;  %v1936_v5 = vpop.eup %1935 }
 0x2ba   : > { %734 = vadd.xlane.f32.xlu1 %v733_v1  ;;  %v730_v6 = vsel %vm614_vm2, %v1936_v5, 0.0 }
 0x2c0   : > { %818 = vrot.lane.b32.xlu0 %v684_v32, %s2059_s16 }
 0x2c2   : > { %797 = vrot.lane.b32.xlu2 %v660_v28, %s2059_s16 }
 0x2c8   : > { %754 = vrot.lane.b32.xlu0 %v2256_v18, %s2059_s16 }
 0x2d3   : > { %776 = vrot.lane.b32.xlu1 %v2260_v22, %s2059_s16 }
 0x2fd   : > { %731 = vadd.xlane.f32.xlu1 %v730_v6 }
 0x31d   : > { %v738_v7 = vpop.xlane.xlu2 %737 }
 0x31e   : > { %1937 = vrcp.f32 %v738_v7  ;;  %v1839_v7 = vld [vmem:[%s2525_s10 + $0x10] sm:$0xff] }
 0x31f   : > { %v741_v11 = vpop.xlane.xlu0 %740 }
 0x320   : > { %1939 = vrcp.f32 %v741_v11 }
 0x324   : > { %v1938_v8 = vpop.eup %1937 }
 0x325   : > { %v748_v9 = vmul.f32 %v1938_v8, %v1930_v57  ;;  %v798_v12 = vpop.permute.xlu2 %797 }
 0x326   : > { %v803_v13 = vsel %vm759_vm3, %v798_v12, 0  ;;  %v1940_v15 = vpop.eup %1939 }
 0x327   : > { %812 = vmatpush.bf16.msrb.mxu3 %v803_v13  ;;  %v752_v14 = vpack.c.bf16 %v748_v9, %v748_v9  ;;  %v749_v16 = vmul.f32 %v1940_v15, %v1932_v59 }
 0x329   : > { %v753_v19 = vpack.c.bf16 %v749_v16, %v749_v16  ;;  %v1914_v16 = vld [vmem:[%s2521_s6] ss:$0 sm:$0xff] }
 0x32a   : > { %1701 = vmatmul.msk.bf16.vlgmr.msrb.gmra.mxu3 %vm614_vm2, %v752_v14 }
 0x32b   : > { %1016 = vmatpush.bf16.msra.mxu3 %v1840_v4 }
 0x32d   : > { %v735_v20 = vpop.xlane.xlu1 %734 }
 0x32e   : > { %1941 = vrcp.f32 %v735_v20 }
 0x32f   : > { %1017 = vmatpush.bf16.msra.mxu3 %v1839_v7 }
 0x332   : > { %v819_v17 = vpop.permute.xlu0 %818 }
 0x333   : > { %v824_v18 = vsel %vm759_vm3, %v819_v17, 0 }
 0x334   : > { %833 = vmatpush.bf16.msra.mxu0 %v824_v18  ;;  %v1942_v23 = vpop.eup %1941  ;;  %v1915_v18 = vld [vmem:[%s2522_s7] ss:$0 sm:$0xff] }
 0x335   : > { %v747_v24 = vmul.f32 %v1942_v23, %v1934_v0  ;;  %v1838_v23 = vld [vmem:[%s2525_s10 + $0x8] sm:$0xff] }
 0x336   : > { %1018 = vmatpush.bf16.msra.mxu3 %v1838_v23 }
 0x337   : > { %1702 = vmatmul.msk.bf16.vlgmr.msra.gmra.mxu0 %vm614_vm2, %v753_v19  ;;  %v751_v27 = vpack.c.bf16 %v747_v24, %v747_v24  ;;  %v1837_v24 = vld [vmem:[%s2525_s10] sm:$0xff] }
 0x33a   : > { %v755_v21 = vpop.permute.xlu0 %754  ;;  %1019 = vmatpush.bf16.msra.mxu3 %v1837_v24 }
 0x33b   : > { %v761_v22 = vsel %vm759_vm3, %v755_v21, 0 }
 0x33c   : > { %770 = vmatpush.bf16.msrb.mxu1 %v761_v22 }
 0x340   : > { %886 = vmatpush.bf16.msra.mxu1 %v1834_v40 }
 0x344   : > { %887 = vmatpush.bf16.msra.mxu1 %v1833_v41 }
 0x345   : > { %v777_v25 = vpop.permute.xlu1 %776 }
 0x346   : > { %v782_v26 = vsel %vm759_vm3, %v777_v25, 0  ;;  %v1916_v25 = vld [vmem:[%s2524_s9] ss:$0 sm:$0xff] }
 0x347   : > { %791 = vmatpush.bf16.msrb.mxu2 %v782_v26 }
 0x34a   : > { %1700 = vmatmul.msk.bf16.vlgmr.msrb.gmra.mxu2 %vm614_vm2, %v751_v27 }
 0x34b   : > { %963 = vmatpush.bf16.msra.mxu2 %v1836_v2 }
 0x34f   : > { %964 = vmatpush.bf16.msra.mxu2 %v1835_v3 }
 0x370   : > { %v732_v28 = vpop.xlane.xlu1 %731 }
 0x371   : > { %1943 = vrcp.f32 %v732_v28 }
 0x372   : > { %1945 = vrcp.f32 %v2063_v55  ;;  %v1919_v55 = vld [vmem:[%s2566_s25] ss:$0 sm:$0xff] }
 0x377   : > { %v1944_v29 = vpop.eup %1943 }
 0x378   : > { %v746_v30 = vmul.f32 %v1944_v29, %v1936_v5  ;;  %v1946_v56 = vpop.eup %1945 }
 0x379   : > { %v900_v57 = vmul.f32 32.0, %v1946_v56  ;;  %vm904_vm6 = vweird.f32 %v1946_v56 }
 0x37a   : > { %v750_v31 = vpack.c.bf16 %v746_v30, %v746_v30 }
 0x37b   : > { %v901_v58 = vsub.f32 1.0, %v900_v57 }
 0x37c   : > { %1699 = vmatmul.msk.bf16.vlgmr.msrb.gmra.mxu1 %vm614_vm2, %v750_v31  ;;  %v1917_v31 = vld [vmem:[%s2526_s11] ss:$0 sm:$0xff] }
 0x37d   : > { %v902_v59 = vmul.f32 %v1946_v56, %v901_v58 }
 0x37f   : > { %v903_v60 = vadd.f32 %v1946_v56, %v902_v59 }
 0x381   : > { %v2314_v61 = vsel %vm904_vm6, %v1946_v56, %v903_v60  ;;  %v1920_v60 = vld [vmem:[%s2518_s3 + $0x1] ss:$0 sm:$0xff] }
 0x3ad   : > { %v814_v32 = vpop.f32.mrf.mxu3 }
 0x3ae   : > { %844 = vrot.lane.b32.xlu0 %v814_v32, %s2060_s13 }
 0x3b4   : > { %v835_v33 = vpop.f32.mrf.mxu0 }
 0x3b5   : > { %v816_v34 = vpop.f32.mrf.mxu3 }
 0x3bc   : > { %v837_v35 = vpop.f32.mrf.mxu0 }
 0x3cd   : > { %v793_v36 = vpop.f32.mrf.mxu2 }
 0x3ce   : > { %840 = vrot.lane.b32.xlu2 %v793_v36, %s2061_s14 }
 0x3d5   : > { %v795_v37 = vpop.f32.mrf.mxu2 }
 0x3d6   : > { %848 = vrot.lane.b32.xlu2 %v835_v33, %s2062_s24 }
 0x3f9   : > { %v772_v38 = vpop.f32.mrf.mxu1 }
 0x401   : > { %v774_v39 = vpop.f32.mrf.mxu1 }
 0x420   : > { %v845_v44 = vpop.permute.xlu0 %844 }
 0x428   : > { %v841_v42 = vpop.permute.xlu2 %840 }
 0x429   : > { %v851_v43 = vsel %vm614_vm2, %v772_v38, %v841_v42  ;;  %v1842_v42 = vld [vmem:[%s2517_s2 + $0x18] sm:$0xff] }
 0x42a   : > { %v853_v46 = vsel %vm852_vm4, %v851_v43, %v845_v44  ;;  %1090 = vmatpush.bf16.msrb.mxu0 %v1842_v42  ;;  %v1841_v43 = vld [vmem:[%s2517_s2 + $0x10] sm:$0xff] }
 0x42e   : > { %1091 = vmatpush.bf16.msrb.mxu0 %v1841_v43 }
 0x430   : > { %v849_v45 = vpop.permute.xlu2 %848 }
 0x431   : > { %v855_v47 = vsel %vm854_vm5, %v853_v46, %v849_v45 }
 0x432   : > { %v856_v48 = vpack.c.bf16 %v855_v47, %v855_v47 }
 0x434   : > { %1711 = vmatmul.msk.bf16.vlgmr.msra.gmra.mxu1 %vm578_vm1, %v856_v48 }
 0x4b1   : > { %v889_v50 = vpop.f32.mrf.mxu1 }
 0x4b2   : > { %v890_v51 = vadd.f32 %v1913_v49, %v889_v50 }
 0x4b4   : > { %v893_v52 = vadd.f32 %v890_v51, %v2245_v10 }
 0x4b6   : > { %v896_v53 = vsel %vm578_vm1, %v893_v52, 0.0 }
 0x4b7   : > { %897 = vadd.xlane.f32.xlu0 %v896_v53  ;;  %v1918_v53 = vld [vmem:[%s2564_s22] ss:$0 sm:$0xff] }
 0x4b9   : > { %v891_v54 = vpop.f32.mrf.mxu1 }
 0x52a   : > { %v898_v62 = vpop.xlane.xlu0 %897 }
 0x52b   : > { %v906_v63 = vmul.f32 %v2314_v61, %v898_v62 }
 0x52d   : > { %v907_v0 = vsub.f32 %v893_v52, %v906_v63 }
 0x52f   : > { %v908_v1 = vmul.f32 %v907_v0, %v907_v0 }
 0x531   : > { %v909_v10 = vsel %vm578_vm1, %v908_v1, 0.0 }
 0x532   : > { %910 = vadd.xlane.f32.xlu2 %v909_v10 }
 0x5a5   : > { %v911_v5 = vpop.xlane.xlu2 %910 }
 0x5a6   : > { %v912_v6 = vmul.f32 %v911_v5, %v2314_v61 }
 0x5a8   : > { %v913_v8 = vadd.f32 1e-05, %v912_v6 }
 0x5aa   : > { %1947 = vrsqrt.f32 %v913_v8  ;;  %vm920_vm8 = vweird.f32 %v913_v8 }
 0x5b0   : > { %v1948_v9 = vpop.eup %1947 }
 0x5b1   : > { %v915_v11 = vmul.f32 %v1948_v9, %v913_v8  ;;  %vm921_vm7 = vweird.f32 %v1948_v9 }
 0x5b2   : > { %vm922_vm9 = vmor %vm920_vm8, %vm921_vm7 }
 0x5b3   : > { %v916_v12 = vmul.f32 %v1948_v9, %v915_v11 }
 0x5b5   : > { %v917_v13 = vmul.f32 0.5, %v916_v12 }
 0x5b7   : > { %v918_v14 = vsub.f32 1.5, %v917_v13 }
 0x5b9   : > { %v919_v15 = vmul.f32 %v1948_v9, %v918_v14 }
 0x5bb   : > { %v923_v17 = vsel %vm922_vm9, %v1948_v9, %v919_v15 }
 0x5bc   : > { %v924_v19 = vmul.f32 %v923_v17, %v907_v0 }
 0x5be   : > { %v928_v20 = vmul.f32 %v1914_v16, %v924_v19 }
 0x5c0   : > { %v932_v21 = vadd.f32 %v1915_v18, %v928_v20 }
 0x5c2   : > { %v933_v22 = vpack.c.bf16 %v932_v21, %v932_v21 }
 0x5c4   : > { %1720 = vmatmul.msk.bf16.vlgmr.msra.gmra.mxu2 %vm578_vm1, %v933_v22 }
 0x647   : > { %v966_v26 = vpop.f32.mrf.mxu2 }
 0x648   : > { %v967_v27 = vadd.f32 %v1916_v25, %v966_v26 }
 0x64a   : > { %v970_v28 = vmax.f32 %v967_v27, 0.0 }
 0x64c   : > { %v971_v29 = vpack.c.bf16 %v970_v28, %v970_v28 }
 0x64e   : > { %1737 = vmatmul.msk.bf16.vlgmr.msra.gmra.mxu3 %vm1008_vm10, %v971_v29 }
 0x64f   : > { %v968_v30 = vpop.f32.mrf.mxu2 }
 0x6d1   : > { %v1021_v32 = vpop.f32.mrf.mxu3 }
 0x6d2   : > { %v1022_v33 = vadd.f32 %v1917_v31, %v1021_v32 }
 0x6d4   : > { %v1025_v34 = vadd.f32 %v1022_v33, %v932_v21 }
 0x6d6   : > { %v1028_v35 = vsel %vm578_vm1, %v1025_v34, 0.0 }
 0x6d7   : > { %1029 = vadd.xlane.f32.xlu1 %v1028_v35 }
 0x6d9   : > { %v1023_v36 = vpop.f32.mrf.mxu3 }
 0x74a   : > { %v1030_v37 = vpop.xlane.xlu1 %1029 }
 0x74b   : > { %v1031_v38 = vmul.f32 %v1030_v37, %v2314_v61 }
 0x74d   : > { %v1032_v39 = vsub.f32 %v1025_v34, %v1031_v38 }
 0x74f   : > { %v1033_v40 = vmul.f32 %v1032_v39, %v1032_v39 }
 0x751   : > { %v1034_v41 = vsel %vm578_vm1, %v1033_v40, 0.0 }
 0x752   : > { %1035 = vadd.xlane.f32.xlu1 %v1034_v41 }
 0x7c5   : > { %v1036_v44 = vpop.xlane.xlu1 %1035 }
 0x7c6   : > { %v1037_v45 = vmul.f32 %v1036_v44, %v2314_v61 }
 0x7c8   : > { %v1038_v46 = vadd.f32 1e-05, %v1037_v45 }
 0x7ca   : > { %1949 = vrsqrt.f32 %v1038_v46  ;;  %vm1045_vm12 = vweird.f32 %v1038_v46 }
 0x7d0   : > { %v1950_v47 = vpop.eup %1949 }
 0x7d1   : > { %v1040_v48 = vmul.f32 %v1950_v47, %v1038_v46  ;;  %vm1046_vm11 = vweird.f32 %v1950_v47 }
 0x7d2   : > { %vm1047_vm13 = vmor %vm1045_vm12, %vm1046_vm11 }
 0x7d3   : > { %v1041_v49 = vmul.f32 %v1950_v47, %v1040_v48 }
 0x7d5   : > { %v1042_v50 = vmul.f32 0.5, %v1041_v49 }
 0x7d7   : > { %v1043_v51 = vsub.f32 1.5, %v1042_v50 }
 0x7d9   : > { %v1044_v52 = vmul.f32 %v1950_v47, %v1043_v51 }
 0x7db   : > { %v1048_v54 = vsel %vm1047_vm13, %v1950_v47, %v1044_v52 }
 0x7dc   : > { %v1049_v56 = vmul.f32 %v1048_v54, %v1032_v39 }
 0x7de   : > { %v1053_v57 = vmul.f32 %v1918_v53, %v1049_v56 }
 0x7e0   : > { %v2367_v58 = vadd.f32 %v1919_v55, %v1053_v57 }
 0x7e2   : > { %v1058_v59 = vpack.c.bf16 %v2367_v58, %v2367_v58 }
 0x7e4   : > { %1751 = vmatmul.msk.bf16.vlgmr.msrb.gmra.mxu0 %vm578_vm1, %v1058_v59 }
 0x861   : > { %v1093_v62 = vpop.f32.mrf.mxu0 }
 0x862   : > { %v1094_v63 = vadd.f32 %v1920_v60, %v1093_v62 }
 0x864   : > { %1104 = vrot.lane.b32.xlu2 %v1094_v63, %s2055_s28  ;;  %1101 = vrot.lane.b32.xlu0 %v1094_v63, %s2057_s15  ;;  %v1107_v13 = vpack.c.bf16 %v1094_v63, %v1094_v63 }
 0x865   : > { %1098 = vrot.lane.b32.xlu1 %v1094_v63, %s2056_s17 }
 0x866   : > { %v1112_v14 = vunpack.c.l.b16 %v1107_v13 }
 0x868   : > { %v1113_v15 = vpack.c.b16 %v1112_v14, %v1112_v14 }
 0x869   : > { %v1095_v0 = vpop.f32.mrf.mxu0 }
 0x8be   : > { %v1105_v1 = vpop.permute.xlu2 %1104 }
 0x8bf   : > { %v1110_v10 = vpack.c.bf16 %v1105_v1, %v1105_v1 }
 0x8c1   : > { %v1184_v2 = vunpack.c.l.b16 %v1110_v10 }
 0x8c3   : > { %v1185_v3 = vpack.c.b16 %v1184_v2, %v1184_v2 }
 0x8c5   : > { %1186 = vrot.lane.b32.xlu2 %v1185_v3, %s2058_s0 }
 0x8d6   : > { %v1102_v4 = vpop.permute.xlu0 %1101 }
 0x8d7   : > { %v1109_v5 = vpack.c.bf16 %v1102_v4, %v1102_v4  ;;  %v1099_v6 = vpop.permute.xlu1 %1098 }
 0x8d8   : > { %v1108_v7 = vpack.c.bf16 %v1099_v6, %v1099_v6 }
 0x8d9   : > { %v1160_v8 = vunpack.c.l.b16 %v1109_v5 }
 0x8da   : > { %v1136_v9 = vunpack.c.l.b16 %v1108_v7 }
 0x8db   : > { %v1161_v11 = vpack.c.b16 %v1160_v8, %v1160_v8 }
 0x8dc   : > { %v1137_v12 = vpack.c.b16 %v1136_v9, %v1136_v9 }
 0x8dd   : > { %1162 = vrot.lane.b32.xlu1 %v1161_v11, %s2058_s0 }
 0x8de   : > { %1138 = vrot.lane.b32.xlu0 %v1137_v12, %s2058_s0 }
 0x8e6   : > { %1114 = vrot.lane.b32.xlu0 %v1113_v15, %s2058_s0  ;;  %s511_s0 = sand.u32 1, %s2569_s19  }
 0x8e7   : > { %s1597_s15 = scalar_lea.sflag [#allocation4], %s511_s0 }
 0x91f   : > { %v1187_v16 = vpop.permute.xlu2 %1186 }
 0x920   : > { %v1192_v17 = vsel %vm614_vm2, %v1187_v16, 0 }
 0x921   : > { %1201 = vmatpush.bf16.xpose.msra.mxu0 %v1192_v17 }
 0x928   : > { %1755 = vmatmul.msk.bf16.vlgmr.msra.gmra.mxu0 %vm614_vm2, %v1110_v10 }
 0x94f   : > { %v1163_v18 = vpop.permute.xlu1 %1162 }
 0x950   : > { %v1139_v19 = vpop.permute.xlu0 %1138  ;;  %v1168_v20 = vsel %vm614_vm2, %v1163_v18, 0 }
 0x951   : > { %v1144_v21 = vsel %vm614_vm2, %v1139_v19, 0  ;;  %1177 = vmatpush.bf16.xpose.msrb.mxu3 %v1168_v20 }
 0x952   : > { %1153 = vmatpush.bf16.xpose.msrb.mxu2 %v1144_v21 }
 0x958   : > { %v1115_v22 = vpop.permute.xlu0 %1114  ;;  %1754 = vmatmul.msk.bf16.vlgmr.msrb.gmra.mxu3 %vm614_vm2, %v1109_v5 }
 0x959   : > { %v1120_v23 = vsel %vm614_vm2, %v1115_v22, 0  ;;  %1753 = vmatmul.msk.bf16.vlgmr.msrb.gmra.mxu2 %vm614_vm2, %v1108_v7 }
 0x95a   : > { %1129 = vmatpush.bf16.xpose.msrb.mxu1 %v1120_v23 }
 0x961   : > { %1752 = vmatmul.msk.bf16.vlgmr.msrb.gmra.mxu1 %vm614_vm2, %v1107_v13 }
 0x9a5   : > { %v1203_v24 = vpop.f32.mrf.mxu0 }
 0x9a6   : > { %v1216_v25 = vsel %vm614_vm2, %v1203_v24, -inf }
 0x9a7   : > { %1217 = vmax.xlane.f32.xlu0 %v1216_v25 }
 0x9ad   : > { %v1205_v26 = vpop.f32.mrf.mxu0 }
 0x9ae   : > { %v1844_v26 = vld [vmem:[%s2519_s4 + $0x18] sm:$0xff] }
 0x9db   : > { %v1179_v27 = vpop.f32.mrf.mxu3 }
 0x9dc   : > { %v1155_v28 = vpop.f32.mrf.mxu2  ;;  %v1213_v29 = vsel %vm614_vm2, %v1179_v27, -inf }
 0x9dd   : > { %v1210_v30 = vsel %vm614_vm2, %v1155_v28, -inf  ;;  %1214 = vmax.xlane.f32.xlu2 %v1213_v29 }
 0x9de   : > { %1211 = vmax.xlane.f32.xlu1 %v1210_v30  ;;  %v1131_v31 = vpop.f32.mrf.mxu1 }
 0x9df   : > { %v1207_v34 = vsel %vm614_vm2, %v1131_v31, -inf }
 0x9e3   : > { %v1181_v32 = vpop.f32.mrf.mxu3 }
 0x9e4   : > { %v1157_v33 = vpop.f32.mrf.mxu2 }
 0x9e6   : > { %1208 = vmax.xlane.f32.xlu1 %v1207_v34  ;;  %v1133_v35 = vpop.f32.mrf.mxu1 }
 0x9e7   : > { %v1921_v35 = vld [vmem:[%s2520_s5 + $0x1] ss:$0 sm:$0xff] }
 0xa1a   : > { %v1218_v36 = vpop.xlane.xlu0 %1217 }
 0xa1b   : > { %v1222_v37 = vsub.f32 %v1203_v24, %v1218_v36 }
 0xa1d   : > { %v1229_v38 = vmul.f32 1.442695, %v1222_v37 }
 0xa1f   : > { %1951 = vpow2.f32 %v1229_v38 }
 0xa25   : > { %v1952_v39 = vpop.eup %1951 }
 0xa26   : > { %v1240_v40 = vsel %vm614_vm2, %v1952_v39, 0.0 }
 0xa27   : > { %1241 = vadd.xlane.f32.xlu1 %v1240_v40 }
 0xa40   : > { %1318 = vrot.lane.b32.xlu1 %v1185_v3, %s2059_s16 }
 0xa50   : > { %v1215_v41 = vpop.xlane.xlu2 %1214 }
 0xa51   : > { %v1221_v42 = vsub.f32 %v1179_v27, %v1215_v41  ;;  %v1212_v43 = vpop.xlane.xlu1 %1211  ;;  %v1843_v27 = vld [vmem:[%s2519_s4 + $0x10] sm:$0xff] }
 0xa52   : > { %v1220_v44 = vsub.f32 %v1155_v28, %v1212_v43 }
 0xa53   : > { %v1227_v45 = vmul.f32 1.442695, %v1221_v42 }
 0xa54   : > { %v1225_v46 = vmul.f32 1.442695, %v1220_v44 }
 0xa55   : > { %1953 = vpow2.f32 %v1227_v45 }
 0xa56   : > { %1955 = vpow2.f32 %v1225_v46  ;;  %v1846_v46 = vld [vmem:[%s2523_s8 + $0x18] sm:$0xff] }
 0xa59   : > { %v1209_v51 = vpop.xlane.xlu1 %1208 }
 0xa5a   : > { %v1219_v52 = vsub.f32 %v1131_v31, %v1209_v51 }
 0xa5b   : > { %v1954_v47 = vpop.eup %1953 }
 0xa5c   : > { %v1956_v48 = vpop.eup %1955  ;;  %v1237_v49 = vsel %vm614_vm2, %v1954_v47, 0.0  ;;  %v1223_v53 = vmul.f32 1.442695, %v1219_v52 }
 0xa5d   : > { %v1234_v50 = vsel %vm614_vm2, %v1956_v48, 0.0  ;;  %1238 = vadd.xlane.f32.xlu0 %v1237_v49 }
 0xa5e   : > { %1235 = vadd.xlane.f32.xlu2 %v1234_v50  ;;  %1957 = vpow2.f32 %v1223_v53  ;;  %v1849_v50 = vld [vmem:[%s2525_s10 + $0x30] sm:$0xff] }
 0xa64   : > { %v1958_v54 = vpop.eup %1957 }
 0xa65   : > { %v1231_v55 = vsel %vm614_vm2, %v1958_v54, 0.0 }
 0xa71   : > { %1297 = vrot.lane.b32.xlu0 %v1161_v11, %s2059_s16 }
 0xa76   : > { %1276 = vrot.lane.b32.xlu2 %v1137_v12, %s2059_s16 }
 0xa7e   : > { %1255 = vrot.lane.b32.xlu2 %v1113_v15, %s2059_s16  ;;  %s1684_s16 = sshll.u32 %s511_s0, 3 }
 0xa7f   : > { %s513_s26 = scalar_lea.vmem [#allocation6], %s1684_s16 }
 0xa80   : > { %s1609_s28 = sshll.u32 %s513_s26, 4  ;;  %s1610_s28 = int_to_ptr.vmem [resolvable:$true] %s1609_s28 }
 0xa9a   : > { %v1242_v56 = vpop.xlane.xlu1 %1241 }
 0xa9b   : > { %1232 = vadd.xlane.f32.xlu0 %v1231_v55  ;;  %1959 = vrcp.f32 %v1242_v56 }
 0xaa1   : > { %v1960_v57 = vpop.eup %1959 }
 0xaa2   : > { %v1250_v59 = vmul.f32 %v1960_v57, %v1952_v39 }
 0xaa4   : > { %v1254_v63 = vpack.c.bf16 %v1250_v59, %v1250_v59  ;;  %v1922_v59 = vld [vmem:[%s2521_s6 + $0x1] ss:$0 sm:$0xff] }
 0xab2   : > { %v1319_v60 = vpop.permute.xlu1 %1318 }
 0xab3   : > { %v1324_v62 = vsel %vm759_vm3, %v1319_v60, 0 }
 0xab4   : > { %1333 = vmatpush.bf16.msrb.mxu0 %v1324_v62  ;;  %v1923_v62 = vld [vmem:[%s2522_s7 + $0x1] ss:$0 sm:$0xff] }
 0xab7   : > { %1759 = vmatmul.msk.bf16.vlgmr.msrb.gmra.mxu0 %vm614_vm2, %v1254_v63 }
 0xad0   : > { %v1239_v1 = vpop.xlane.xlu0 %1238 }
 0xad1   : > { %v1236_v0 = vpop.xlane.xlu2 %1235 }
 0xad2   : > { %1961 = vrcp.f32 %v1236_v0 }
 0xad3   : > { %1963 = vrcp.f32 %v1239_v1 }
 0xad8   : > { %v1962_v10 = vpop.eup %1961 }
 0xad9   : > { %v1248_v2 = vmul.f32 %v1962_v10, %v1956_v48  ;;  %v1277_v3 = vpop.permute.xlu2 %1276  ;;  %v1964_v6 = vpop.eup %1963 }
 0xada   : > { %v1282_v4 = vsel %vm759_vm3, %v1277_v3, 0  ;;  %v1249_v8 = vmul.f32 %v1964_v6, %v1954_v47  ;;  %v1850_v47 = vld [vmem:[%s2525_s10 + $0x38] sm:$0xff]  ;;  %v1847_v3 = vld [vmem:[%s2525_s10 + $0x20] sm:$0xff] }
 0xadb   : > { %v1252_v5 = vpack.c.bf16 %v1248_v2, %v1248_v2  ;;  %1291 = vmatpush.bf16.msra.mxu2 %v1282_v4  ;;  %v1848_v2 = vld [vmem:[%s2525_s10 + $0x28] sm:$0xff]  ;;  %v1924_v4 = vld [vmem:[%s2524_s9 + $0x1] ss:$0 sm:$0xff] }
 0xadc   : > { %v1253_v13 = vpack.c.bf16 %v1249_v8, %v1249_v8 }
 0xade   : > { %1757 = vmatmul.msk.bf16.vlgmr.msra.gmra.mxu2 %vm614_vm2, %v1252_v5 }
 0xadf   : > { %1460 = vmatpush.bf16.msrb.mxu2 %v1846_v46 }
 0xae1   : > { %v1256_v7 = vpop.permute.xlu2 %1255 }
 0xae2   : > { %v1261_v9 = vsel %vm759_vm3, %v1256_v7, 0 }
 0xae3   : > { %1270 = vmatpush.bf16.msra.mxu1 %v1261_v9  ;;  %v1298_v11 = vpop.permute.xlu0 %1297 }
 0xae4   : > { %v1303_v12 = vsel %vm759_vm3, %v1298_v11, 0  ;;  %v1925_v11 = vld [vmem:[%s2526_s11 + $0x1] ss:$0 sm:$0xff] }
 0xae5   : > { %1312 = vmatpush.bf16.msra.mxu3 %v1303_v12 }
 0xae7   : > { %1386 = vmatpush.bf16.msrb.mxu1 %v1844_v26 }
 0xae8   : > { %1758 = vmatmul.msk.bf16.vlgmr.msra.gmra.mxu3 %vm614_vm2, %v1253_v13 }
 0xae9   : > { %1514 = vmatpush.bf16.msrb.mxu3 %v1850_v47 }
 0xaeb   : > { %1387 = vmatpush.bf16.msrb.mxu1 %v1843_v27 }
 0xaed   : > { %1515 = vmatpush.bf16.msrb.mxu3 %v1849_v50 }
 0xaf1   : > { %1516 = vmatpush.bf16.msrb.mxu3 %v1848_v2 }
 0xaf5   : > { %1517 = vmatpush.bf16.msrb.mxu3 %v1847_v3 }
 0xb0e   : > { %v1233_v14 = vpop.xlane.xlu0 %1232 }
 0xb0f   : > { %1965 = vrcp.f32 %v1233_v14 }
 0xb15   : > { %v1966_v15 = vpop.eup %1965 }
 0xb16   : > { %v1247_v16 = vmul.f32 %v1966_v15, %v1958_v54 }
 0xb18   : > { %v1251_v17 = vpack.c.bf16 %v1247_v16, %v1247_v16 }
 0xb1a   : > { %1756 = vmatmul.msk.bf16.vlgmr.msra.gmra.mxu1 %vm614_vm2, %v1251_v17 }
 0xb34   : > { %v1335_v18 = vpop.f32.mrf.mxu0 }
 0xb3c   : > { %v1337_v19 = vpop.f32.mrf.mxu0 }
 0xb61   : > { %v1293_v20 = vpop.f32.mrf.mxu2 }
 0xb62   : > { %1340 = vrot.lane.b32.xlu1 %v1293_v20, %s2061_s14 }
 0xb69   : > { %v1295_v21 = vpop.f32.mrf.mxu2 }
 0xb6a   : > { %1348 = vrot.lane.b32.xlu1 %v1335_v18, %s2062_s24  ;;  %s2570_s24 = sld [smem:[#allocation23_spill]] }
 0xb6b   : > { %v1314_v22 = vpop.f32.mrf.mxu3 }
 0xb6c   : > { %1344 = vrot.lane.b32.xlu2 %v1314_v22, %s2060_s13  ;;  %v1852_v22 = vld [vmem:[%s2567_s21 + $0x8] sm:$0xff] }
 0xb6d   : > { %1588 = vmatpush.bf16.msra.mxu0 %v1852_v22 }
 0xb70   : > { %s2571_s27 = smov %s2570_s24  ;;  %s1607_s29 = scalar_lea.hbm %s2570_s24, %s2200_s23 }
 0xb71   : > { %s1611_s17 = sshll.u32 %s1607_s29, 4  ;;  %s2006_s14 = scalar_lea.hbm %s2571_s27, 16  ;;  %s1612_s17 = int_to_ptr.hbm [resolvable:$true] %s1611_s17 }
 0xb72   : > { %s2000_s19 = sshra.s32 %s1612_s17, 4  ;;  %s2001_s19 = int_to_ptr.hbm [resolvable:$true] %s2000_s19 }
 0xb73   : > { %v1316_v23 = vpop.f32.mrf.mxu3  ;;  %s2002_s1 = scalar_lea.hbm %s2001_s19, 8  ;;  %p2007_p2 = scmp.lt.s32.totalorder %s2001_s19, %s2571_s27 }
 0xb74   : > { %v1851_v23 = vld [vmem:[%s2568_s30] sm:$0xff]  ;;  %p2003_p13 = scmp.ne.s32.totalorder %s2001_s19, %s2002_s1  ;;  %p2008_p3 = scmp.lt.s32.totalorder %s2006_s14, %s2002_s1 }
 0xb75   : > { %1589 = vmatpush.bf16.msra.mxu0 %v1851_v23 }
 0xb76   : > { %p2004_p0 = pnand %p2003_p13, %p2184_p5  ;;  %p2009_p4 = por %p2008_p3, %p2007_p2 }
 0xb78   : > { %p2005_p1 = pneg %p2004_p0 }
 0xb7a   : > { %p2010_p7 = pnand %p2009_p4, %p2005_p1 }
 0xb97   : > { %v1272_v24 = vpop.f32.mrf.mxu1 }
 0xb9f   : > { %v1274_v25 = vpop.f32.mrf.mxu1 }
 0xbc6   : > { %v1345_v30 = vpop.permute.xlu2 %1344 }
 0xbd4   : > { %v1341_v28 = vpop.permute.xlu1 %1340 }
 0xbd5   : > { %v1351_v29 = vsel %vm614_vm2, %v1272_v24, %v1341_v28 }
 0xbd6   : > { %v1352_v32 = vsel %vm852_vm4, %v1351_v29, %v1345_v30 }
 0xbdc   : > { %v1349_v31 = vpop.permute.xlu1 %1348 }
 0xbdd   : > { %v1353_v33 = vsel %vm854_vm5, %v1352_v32, %v1349_v31 }
 0xbde   : > { %v1354_v34 = vpack.c.bf16 %v1353_v33, %v1353_v33  ;;  %v1926_v33 = vld [vmem:[%s2565_s18 + $0x1] ss:$0 sm:$0xff] }
 0xbe0   : > { %1773 = vmatmul.msk.bf16.vlgmr.msrb.gmra.mxu1 %vm578_vm1, %v1354_v34 }
 0xc5d   : > { %v1389_v36 = vpop.f32.mrf.mxu1 }
 0xc5e   : > { %v1390_v37 = vadd.f32 %v1921_v35, %v1389_v36 }
 0xc60   : > { %v1393_v38 = vadd.f32 %v1390_v37, %v2367_v58  ;;  %v1845_v58 = vld [vmem:[%s2523_s8 + $0x10] sm:$0xff] }
 0xc61   : > { %1461 = vmatpush.bf16.msrb.mxu2 %v1845_v58 }
 0xc62   : > { %v1398_v39 = vsel %vm578_vm1, %v1393_v38, 0.0 }
 0xc63   : > { %1399 = vadd.xlane.f32.xlu2 %v1398_v39  ;;  %v1928_v39 = vld [vmem:[%s2573_s12] ss:$0 sm:$0xff] }
 0xc65   : > { %v1391_v40 = vpop.f32.mrf.mxu1 }
 0xcd6   : > { %v1400_v41 = vpop.xlane.xlu2 %1399 }
 0xcd7   : > { %v1401_v42 = vmul.f32 %v1400_v41, %v2314_v61 }
 0xcd9   : > { %v1402_v43 = vsub.f32 %v1393_v38, %v1401_v42 }
 0xcdb   : > { %v1403_v44 = vmul.f32 %v1402_v43, %v1402_v43 }
 0xcdd   : > { %v1404_v45 = vsel %vm578_vm1, %v1403_v44, 0.0 }
 0xcde   : > { %1405 = vadd.xlane.f32.xlu1 %v1404_v45 }
 0xd51   : > { %v1406_v48 = vpop.xlane.xlu1 %1405 }
 0xd52   : > { %v1407_v49 = vmul.f32 %v1406_v48, %v2314_v61 }
 0xd54   : > { %v1408_v51 = vadd.f32 1e-05, %v1407_v49 }
 0xd56   : > { %1967 = vrsqrt.f32 %v1408_v51  ;;  %vm1415_vm15 = vweird.f32 %v1408_v51 }
 0xd5c   : > { %v1968_v52 = vpop.eup %1967 }
 0xd5d   : > { %v1410_v53 = vmul.f32 %v1968_v52, %v1408_v51  ;;  %vm1416_vm14 = vweird.f32 %v1968_v52 }
 0xd5e   : > { %vm1417_vm0 = vmor %vm1415_vm15, %vm1416_vm14 }
 0xd5f   : > { %v1411_v54 = vmul.f32 %v1968_v52, %v1410_v53 }
 0xd61   : > { %v1412_v55 = vmul.f32 0.5, %v1411_v54 }
 0xd63   : > { %v1413_v56 = vsub.f32 1.5, %v1412_v55 }
 0xd65   : > { %v1414_v57 = vmul.f32 %v1968_v52, %v1413_v56 }
 0xd67   : > { %v1418_v60 = vsel %vm1417_vm0, %v1968_v52, %v1414_v57 }
 0xd68   : > { %v1419_v63 = vmul.f32 %v1418_v60, %v1402_v43 }
 0xd6a   : > { %v1423_v0 = vmul.f32 %v1922_v59, %v1419_v63 }
 0xd6c   : > { %v1427_v1 = vadd.f32 %v1923_v62, %v1423_v0 }
 0xd6e   : > { %v1428_v10 = vpack.c.bf16 %v1427_v1, %v1427_v1 }
 0xd70   : > { %1789 = vmatmul.msk.bf16.vlgmr.msrb.gmra.mxu2 %vm578_vm1, %v1428_v10 }
 0xdf3   : > { %v1463_v5 = vpop.f32.mrf.mxu2 }
 0xdf4   : > { %v1464_v6 = vadd.f32 %v1924_v4, %v1463_v5 }
 0xdf6   : > { %v1467_v7 = vmax.f32 %v1464_v6, 0.0 }
 0xdf8   : > { %v1468_v8 = vpack.c.bf16 %v1467_v7, %v1467_v7 }
 0xdfa   : > { %1815 = vmatmul.msk.bf16.vlgmr.msrb.gmra.mxu3 %vm1008_vm10, %v1468_v8 }
 0xdfb   : > { %v1465_v9 = vpop.f32.mrf.mxu2 }
 0xe7d   : > { %v1519_v12 = vpop.f32.mrf.mxu3 }
 0xe7e   : > { %v1520_v13 = vadd.f32 %v1925_v11, %v1519_v12 }
 0xe80   : > { %v1523_v14 = vadd.f32 %v1520_v13, %v1427_v1 }
 0xe82   : > { %v1528_v15 = vsel %vm578_vm1, %v1523_v14, 0.0 }
 0xe83   : > { %1529 = vadd.xlane.f32.xlu0 %v1528_v15 }
 0xe85   : > { %v1521_v16 = vpop.f32.mrf.mxu3 }
 0xef6   : > { %v1530_v17 = vpop.xlane.xlu0 %1529 }
 0xef7   : > { %v1531_v18 = vmul.f32 %v1530_v17, %v2314_v61 }
 0xef9   : > { %v1532_v19 = vsub.f32 %v1523_v14, %v1531_v18 }
 0xefb   : > { %v1533_v20 = vmul.f32 %v1532_v19, %v1532_v19 }
 0xefd   : > { %v1534_v21 = vsel %vm578_vm1, %v1533_v20, 0.0 }
 0xefe   : > { %1535 = vadd.xlane.f32.xlu0 %v1534_v21 }
 0xf71   : > { %v1536_v24 = vpop.xlane.xlu0 %1535 }
 0xf72   : > { %v1537_v25 = vmul.f32 %v1536_v24, %v2314_v61  ;;  %v1927_v61 = vld [vmem:[%s2566_s25 + $0x1] ss:$0 sm:$0xff] }
 0xf74   : > { %v1538_v26 = vadd.f32 1e-05, %v1537_v25 }
 0xf76   : > { %1969 = vrsqrt.f32 %v1538_v26  ;;  %vm1545_vm3 = vweird.f32 %v1538_v26 }
 0xf7c   : > { %v1970_v27 = vpop.eup %1969 }
 0xf7d   : > { %v1540_v28 = vmul.f32 %v1970_v27, %v1538_v26  ;;  %vm1546_vm2 = vweird.f32 %v1970_v27 }
 0xf7e   : > { %vm1547_vm4 = vmor %vm1545_vm3, %vm1546_vm2 }
 0xf7f   : > { %v1541_v29 = vmul.f32 %v1970_v27, %v1540_v28 }
 0xf81   : > { %v1542_v30 = vmul.f32 0.5, %v1541_v29 }
 0xf83   : > { %v1543_v31 = vsub.f32 1.5, %v1542_v30 }
 0xf85   : > { %v1544_v32 = vmul.f32 %v1970_v27, %v1543_v31 }
 0xf87   : > { %v1548_v34 = vsel %vm1547_vm4, %v1970_v27, %v1544_v32 }
 0xf88   : > { %v1549_v35 = vmul.f32 %v1548_v34, %v1532_v19 }
 0xf8a   : > { %v1553_v36 = vmul.f32 %v1926_v33, %v1549_v35 }
 0xf8c   : > { %v1557_v37 = vadd.f32 %v1927_v61, %v1553_v36 }
 0xf8e   : > { %v1558_v38 = vpack.c.bf16 %v1557_v37, %v1557_v37 }
 0xf90   : > { %1826 = vmatmul.msk.bf16.vlgmr.msra.gmra.mxu0 %vm578_vm1, %v1558_v38 }
0x100d   : > { %v1591_v40 = vpop.f32.mrf.mxu0 }
0x100e   : > { %v1592_v41 = vadd.f32 %v1928_v39, %v1591_v40 }
0x1010   : > { %1595 = vst [vmem:[%s513_s26] sm:$0xff] %v1592_v41 }
0x1011   : > { %2013 = shalt.err (!%p2010_p7)
}
0x1012   : > { %1857 = dma.vmem_to_hbm [thread:$0]  (%p2184_p5), %s1610_s28, 128, %s1612_s17, %s1597_s15  }
0x1015   : > { %v1593_v42 = vpop.f32.mrf.mxu0 }
0x1016 PF: > { %s2574_s0 = sld [smem:[#allocation12_spill]] }
0x1017   : > { %s2575_s29 = sld [smem:[#allocation9_spill]] }
0x101c   : > { %p1869_p8 = scmp.ge.s32.totalorder %s2574_s0, 2 }
0x101d   : > { %s1623_s22 = sand.u32 1, %s2575_s29  }
0x101e   : > { %p1864_p9 = pnand %p1869_p8, %p2188_p6  ;;  %s1624_s12 = scalar_lea.sflag [#allocation4], %s1623_s22 }
0x1020   : > { %p1865_p10 = pneg %p1864_p9 }
0x1022   : > { %2035 = dma.done.wait (%p1865_p10), %s1624_s12, 128  }
0x1023   : > { %2037 = vsyncadd (%p1865_p10), %s1624_s12, 4294967168  ;;  %s2577_s24 = sld [smem:[#allocation13_spill]] }
0x1024   : > { %s2578_s21 = sld [smem:[#allocation10_spill]] }
0x1025   : > { %s2579_s22 = sld [smem:[#allocation11_spill]] }
0x1026   : > { %s2580_s23 = sld [smem:[#allocation14_spill]] }
0x1029   : > { %p27_p11 = scmp.ge.s32.totalorder %s2577_s24, 4  }
0x102b   :  { %29 = sbr.rel (!%p27_p11) target bundleno = 12 (0xc), region = 141 }
0x1030   :  { %1630 = vsyncpa [#allocation4], 1 }
0x1031   :  { %1632 = vsyncpa [#allocation4 + $0x1], 1 }
0x1032   :  { %1633 = vsyncpa [#allocation5], 1 }
0x1033   :  { %1635 = vsyncpa [#allocation5 + $0x1], 1 }

</bundles_post_ra>
